<compile_context>
chip_gen: v7x
topology: tpu7x:2x2x1
jax: 0.10.0
libtpu: 0.0.40
codegen_flags: <defaults>
</compile_context>

<pallas_src>
import functools
import math

import jax
import jax.numpy as jnp
import numpy as np
from jax import lax
from jax.experimental import pallas as pl
from jax.experimental.pallas import tpu as pltpu

_BB = 8      # batch rows per block = one f32 sublane group
_PACK = 8    # packed output lanes: 0=log_prob, 1=entropy, 2=value, rest zero


# ----------------------------- elementwise math -----------------------------

def _softplus(x):
    # numerically stable softplus (matches torch.nn.functional.softplus)
    return jnp.maximum(x, 0.0) + jnp.log(1.0 + jnp.exp(-jnp.abs(x)))


def _lgamma_digamma(z):
    """Stirling / asymptotic series after shifting by 6 (valid for z >= 1,
    which always holds because alpha, beta = softplus(.) + 1 > 1).

    Returns (lgamma(z), digamma(z)); the shift-correction product is shared so
    the corrections cost one log + one divide total."""
    p0 = z
    p1 = z + 1.0
    p2 = z + 2.0
    p3 = z + 3.0
    p4 = z + 4.0
    p5 = z + 5.0
    a01 = p0 * p1
    a012 = a01 * p2
    a0123 = a012 * p3
    a01234 = a0123 * p4
    s45 = p4 * p5
    s345 = p3 * s45
    s2345 = p2 * s345
    s12345 = p1 * s2345
    den = a01234 * p5                                    # z(z+1)...(z+5)
    num = (s12345 + p0 * s2345 + a01 * s345
           + a012 * s45 + a0123 * p5 + a01234)           # sum_k prod_{j!=k}(z+j)

    zs = z + 6.0
    inv = 1.0 / zs
    inv2 = inv * inv
    log_zs = jnp.log(zs)
    log_den = jnp.log(den)

    lgamma = ((zs - 0.5) * log_zs - zs + 0.5 * jnp.log(2.0 * jnp.pi)
              + inv * (1.0 / 12.0 - inv2 * (1.0 / 360.0 - inv2 * (1.0 / 1260.0)))
              - log_den)
    digamma = (log_zs - 0.5 * inv
               - inv2 * (1.0 / 12.0 - inv2 * (1.0 / 120.0 - inv2 * (1.0 / 252.0)))
               - num / den)
    return lgamma, digamma


# --------------------------------- kernel -----------------------------------

def _policy_kernel(x_ref, keep_ref, a_ref, inv_scale_ref, bias_ref, gmul_ref,
                   h0_ref, c0_ref, wih_ref, whh_ref, blstm_ref,
                   w1_ref, b1_ref, w2_ref, b2_ref, w3_ref, b3_ref,
                   packed_ref, hN_ref, cN_ref,
                   h_sc, c_sc, hs_sc,
                   *, t_tile, hidden, out_dim):
    TT, H, O, BB = t_tile, hidden, out_dim, _BB
    R = TT * BB

    # (0) (re)load the recurrent carry at the first time-tile of each batch block.
    @pl.when(pl.program_id(1) == 0)
    def _():
        h_sc[...] = h0_ref[...]
        c_sc[...] = c0_ref[...]

    # (1) input-side LSTM gate pre-activations for the whole tile in ONE
    #     lane-dense (R, D) @ (D, 4H) matmul (off the serial critical path).
    gx = jnp.dot(x_ref[...], wih_ref[...],
                 preferred_element_type=jnp.float32) + blstm_ref[...]   # (R, 4H)

    gmul = gmul_ref[...]                 # 0.5 on i/f/o lane ranges, 1.0 on g lanes
    gadd = 1.0 - gmul
    whh = whh_ref[...]
    keep_all = jnp.broadcast_to(keep_ref[...], (R, H))   # hoisted off serial path

    # (2) serial LSTM recurrence, fully unrolled (TT static, small): one fused
    #     (BB, H) @ (H, 4H) matmul plus ONE full-width tanh per step
    #     (sigmoid(x) = 0.5*tanh(0.5x) + 0.5 on i/f/o lanes, tanh(x) on g lanes).
    h = h_sc[...]
    c = c_sc[...]
    for t in range(TT):
        r0, r1 = t * BB, (t + 1) * BB
        keep = keep_all[r0:r1, :]                          # episode reset
        h = keep * h
        c = keep * c
        gates = gx[r0:r1, :] + jnp.dot(h, whh,
                                       preferred_element_type=jnp.float32)
        act = gmul * jnp.tanh(gmul * gates) + gadd         # all 4 gates, 1 tanh
        i_g = act[:, 0 * H:1 * H]
        f_g = act[:, 1 * H:2 * H]
        g_g = act[:, 2 * H:3 * H]
        o_g = act[:, 3 * H:4 * H]
        c = f_g * c + i_g * g_g
        h = o_g * jnp.tanh(c)
        hs_sc[r0:r1, :] = h
    h_sc[...] = h
    c_sc[...] = c
    hN_ref[...] = h
    cN_ref[...] = c

    # (3) batched actor/critic heads on the whole (R, H) tile with fused
    #     (concatenated / block-diagonal) pi+vf weights -> 3 matmuls total.
    hflat = hs_sc[...]
    z1 = jnp.tanh(jnp.dot(hflat, w1_ref[...],
                          preferred_element_type=jnp.float32) + b1_ref[...])
    z2 = jnp.tanh(jnp.dot(z1, w2_ref[...],
                          preferred_element_type=jnp.float32) + b2_ref[...])
    out3 = jnp.dot(z2, w3_ref[...],
                   preferred_element_type=jnp.float32) + b3_ref[...]
    alpha = _softplus(out3[:, 0:O]) + 1.0                  # (R, O)
    beta = _softplus(out3[:, O:2 * O]) + 1.0               # (R, O)
    value = out3[:, 2 * O:2 * O + 1]                       # (R, 1)

    # (4) Beta log_prob / entropy: the three lgamma/digamma evaluations are
    #     fused into ONE call on the lane-concatenated [alpha | beta | alpha+beta].
    u = (a_ref[...] - bias_ref[...]) * inv_scale_ref[...]  # (R, O) in (0, 1)
    zab = jnp.concatenate([alpha, beta, alpha + beta], axis=-1)   # (R, 3O)
    lg, dg = _lgamma_digamma(zab)
    lg_a, lg_b, lg_ab = lg[:, 0:O], lg[:, O:2 * O], lg[:, 2 * O:3 * O]
    dg_a, dg_b, dg_ab = dg[:, 0:O], dg[:, O:2 * O], dg[:, 2 * O:3 * O]

    # TODO(synk): log(1-u) is -inf/NaN if the action hits/exceeds the bounds;
    #             this mirrors the reference module semantics (no clamp).
    logp = jnp.sum((alpha - 1.0) * jnp.log(u) + (beta - 1.0) * jnp.log(1.0 - u)
                   - lg_a - lg_b + lg_ab, axis=-1, keepdims=True)
    ent = jnp.sum(lg_a + lg_b - lg_ab
                  - (alpha - 1.0) * dg_a - (beta - 1.0) * dg_b
                  + (alpha + beta - 2.0) * dg_ab, axis=-1, keepdims=True)

    # (5) slim packed output: lanes 0/1/2 = log_prob / entropy / value.
    packed_ref[...] = jnp.concatenate(
        [logp, ent, value, jnp.zeros((R, _PACK - 3), jnp.float32)], axis=-1)


# ------------------------------ weight fusion --------------------------------

def fuse_params(p):
    """Fuse per-layer weights into the kernel's packed layouts."""
    h1 = p["pw1"].shape[1]
    h2 = p["pw2"].shape[1]
    O = p["pwa"].shape[1]

    w2 = jnp.zeros((2 * h1, 2 * h2), jnp.float32)
    w2 = w2.at[:h1, :h2].set(p["pw2"]).at[h1:, h2:].set(p["vw2"])

    w3 = jnp.zeros((2 * h2, 2 * O + 1), jnp.float32)
    w3 = (w3.at[:h2, 0:O].set(p["pwa"])
             .at[:h2, O:2 * O].set(p["pwb"])
             .at[h2:, 2 * O:].set(p["vw3"]))

    return {
        "wih": jnp.concatenate([p["wih"][k] for k in range(4)], axis=1),      # (D, 4H)
        "whh": jnp.concatenate([p["whh"][k] for k in range(4)], axis=1),      # (H, 4H)
        "blstm": jnp.concatenate([p["blstm"][k] for k in range(4)], axis=1),  # (1, 4H)
        "w1": jnp.concatenate([p["pw1"], p["vw1"]], axis=1),                  # (H, 2h1)
        "b1": jnp.concatenate([p["pb1"], p["vb1"]], axis=1),
        "w2": w2,                                                             # block-diag
        "b2": jnp.concatenate([p["pb2"], p["vb2"]], axis=1),
        "w3": w3,                                                             # [alpha|beta|value]
        "b3": jnp.concatenate([p["pba"], p["pbb"], p["vb3"]], axis=1),
        "action_scale": p["action_scale"],
        "action_bias": p["action_bias"],
    }


# ------------------------------- wrapper --------------------------------------

def _round_up(n, m):
    return ((n + m - 1) // m) * m


def _pick_t_tile(T):
    for cand in (8, 4, 2):
        if T % cand == 0:
            return cand
    return 1


def forward(params, x, rnn_state, done_mask, a, *, t_tile=None):
    """Mirrors ActorCriticRNNBetaPolicy.forward(x, rnn_state, done_mask, a)."""
    h0, c0 = rnn_state                       # (num_layers=1, B, H)
    B, H = h0.shape[1], h0.shape[2]
    N, D = x.shape                           # N = T * B, time-major rows
    T = N // B
    O = a.shape[-1]

    TT = t_tile if t_tile is not None else _pick_t_tile(T)
    assert T % TT == 0, "seq_len must be divisible by t_tile"
    nt = T // TT
    Bp = _round_up(max(B, _BB), _BB)
    nb = Bp // _BB
    R = TT * _BB

    fp = fuse_params(params)
    scale = fp["action_scale"]               # (1, O)
    bias = fp["action_bias"]                 # (1, O)
    inv_scale = (1.0 / scale).astype(jnp.float32)

    # gate-activation lane constants: 0.5 for i/f/o lane ranges, 1.0 for g lanes.
    gmul = np.full((1, 4 * H), 0.5, np.float32)
    gmul[0, 2 * H:3 * H] = 1.0
    gmul = jnp.asarray(gmul)

    # --- wrapper-side layout: pad batch to a sublane group (8) and regroup
    #     into (nt, nb, TT*8, feat) slabs so every kernel access is an aligned,
    #     unmasked full-sublane load/store ---
    def pad_batch(arr3, pad):
        if Bp == B:
            return arr3
        return jnp.concatenate(
            [arr3, jnp.broadcast_to(pad, (T, Bp - B, arr3.shape[-1]))], axis=1)

    def to_slabs(arr3):
        F = arr3.shape[-1]
        return (arr3.reshape(nt, TT, nb, _BB, F)
                    .transpose(0, 2, 1, 3, 4)
                    .reshape(nt, nb, R, F))

    x4 = to_slabs(pad_batch(x.astype(jnp.float32).reshape(T, B, D),
                            jnp.float32(0.0)))
    keep4 = to_slabs(pad_batch(
        1.0 - done_mask.astype(jnp.float32).reshape(T, B, 1), jnp.float32(1.0)))
    a4 = to_slabs(pad_batch(a.astype(jnp.float32).reshape(T, B, O),
                            bias + 0.5 * scale))          # benign pad in (lo, hi)
    h0p = jnp.zeros((Bp, H), jnp.float32).at[:B].set(h0[0]).reshape(nb, _BB, H)
    c0p = jnp.zeros((Bp, H), jnp.float32).at[:B].set(c0[0]).reshape(nb, _BB, H)

    inputs = (x4, keep4, a4, inv_scale, bias, gmul, h0p, c0p,
              fp["wih"], fp["whh"], fp["blstm"],
              fp["w1"], fp["b1"], fp["w2"], fp["b2"], fp["w3"], fp["b3"])

    def tmap(bi, ti):   # time-tiled slabs
        return (ti, bi, 0, 0)

    def bmap(bi, ti):   # per batch block, resident over time
        return (bi, 0, 0)

    def cmap(bi, ti):   # fully resident (weights / constants)
        return (0, 0)

    in_specs = [
        pl.BlockSpec((None, None, R, D), tmap),       # x slab
        pl.BlockSpec((None, None, R, 1), tmap),       # keep = 1 - done slab
        pl.BlockSpec((None, None, R, O), tmap),       # action slab
        pl.BlockSpec((1, O), cmap),                   # 1 / action_scale
        pl.BlockSpec((1, O), cmap),                   # action_bias
        pl.BlockSpec((1, 4 * H), cmap),               # gate lane constants
        pl.BlockSpec((None, _BB, H), bmap),           # h0
        pl.BlockSpec((None, _BB, H), bmap),           # c0
    ] + [pl.BlockSpec(w.shape, cmap) for w in inputs[8:]]   # fused weights

    out_specs = (
        pl.BlockSpec((None, None, R, _PACK), tmap),   # packed logp/ent/value
        pl.BlockSpec((None, _BB, H), bmap),           # h_T
        pl.BlockSpec((None, _BB, H), bmap),           # c_T
    )
    out_shapes = (
        jax.ShapeDtypeStruct((nt, nb, R, _PACK), jnp.float32),
        jax.ShapeDtypeStruct((nb, _BB, H), jnp.float32),
        jax.ShapeDtypeStruct((nb, _BB, H), jnp.float32),
    )

    kernel = functools.partial(_policy_kernel, t_tile=TT, hidden=H, out_dim=O)
    packed, hN, cN = pl.pallas_call(
        kernel,
        out_shape=out_shapes,
        grid_spec=pltpu.PrefetchScalarGridSpec(
            num_scalar_prefetch=0,
            grid=(nb, nt),
            in_specs=in_specs,
            out_specs=out_specs,
            scratch_shapes=[pltpu.VMEM((_BB, H), jnp.float32),   # h carry
                            pltpu.VMEM((_BB, H), jnp.float32),   # c carry
                            pltpu.VMEM((R, H), jnp.float32)]),   # h_t per tile
        compiler_params=pltpu.CompilerParams(
            dimension_semantics=("parallel", "arbitrary"),
            vmem_limit_bytes=32 * 1024 * 1024),
    )(*inputs)

    # undo the slab layout, drop batch padding, unpack packed lanes.
    packed = (packed.reshape(nt, nb, TT, _BB, _PACK)
                    .transpose(0, 2, 1, 3, 4)
                    .reshape(T, Bp, _PACK)[:, :B, :]
                    .reshape(N, _PACK))
    hN = hN.reshape(Bp, H)[:B]
    cN = cN.reshape(Bp, H)[:B]

    # ((a - bias)/scale)*scale + bias == a: pass the provided action through.
    act = a.astype(jnp.float32).reshape(N, O)
    return (act,
            packed[:, 0],      # log_prob (summed over action dims)
            packed[:, 1],      # entropy  (summed over action dims)
            packed[:, 2:3],    # value
            (hN[None], cN[None]))


# ------------------------ deterministic parameter init -----------------------

def init_params(key, input_dim, output_dim, hidden_dims, rnn_hidden,
                action_high, action_low):
    ks = jax.random.split(key, 24)
    ki = iter(range(24))

    def u(shape, fan_in):
        bound = 1.0 / math.sqrt(fan_in)
        return jax.random.uniform(ks[next(ki)], shape, jnp.float32, -bound, bound)

    H, D, O = rnn_hidden, input_dim, output_dim
    h1, h2 = hidden_dims
    params = {
        # LSTM (gate-stacked i,f,g,o, already transposed to (in, out))
        "wih": u((4, D, H), H),
        "whh": u((4, H, H), H),
        "blstm": u((4, 1, H), H),            # b_ih + b_hh folded together
        # pi head: H -> h1 -> h2 -> 2*O (last layer split into alpha / beta)
        "pw1": u((H, h1), H), "pb1": u((1, h1), H),
        "pw2": u((h1, h2), h1), "pb2": u((1, h2), h1),
        "pwa": u((h2, O), h2), "pba": u((1, O), h2),
        "pwb": u((h2, O), h2), "pbb": u((1, O), h2),
        # vf head: H -> h1 -> h2 -> 1
        "vw1": u((H, h1), H), "vb1": u((1, h1), H),
        "vw2": u((h1, h2), h1), "vb2": u((1, h2), h1),
        "vw3": u((h2, 1), h2), "vb3": u((1, 1), h2),
        # buffers
        "action_scale": (action_high - action_low).reshape(1, O).astype(jnp.float32),
        "action_bias": action_low.reshape(1, O).astype(jnp.float32),
    }
    return params


# ------------------------------ pure-JAX reference ---------------------------

def reference_forward(params, x, rnn_state, done_mask, a):
    from jax.scipy.special import gammaln, digamma
    h, c = rnn_state[0][0], rnn_state[1][0]
    B, H = h.shape
    D = x.shape[-1]
    T = x.shape[0] // B
    O = a.shape[-1]
    x3 = x.reshape(T, B, D)
    d3 = done_mask.astype(jnp.float32).reshape(T, B, 1)
    a3 = a.reshape(T, B, O)
    scale, bias = params["action_scale"], params["action_bias"]

    acts, logps, ents, vals = [], [], [], []
    for t in range(T):
        keep = 1.0 - d3[t]
        h, c = keep * h, keep * c
        xt = x3[t]
        g = lambda k: xt @ params["wih"][k] + h @ params["whh"][k] + params["blstm"][k]
        i_g = jax.nn.sigmoid(g(0)); f_g = jax.nn.sigmoid(g(1))
        g_g = jnp.tanh(g(2)); o_g = jax.nn.sigmoid(g(3))
        c = f_g * c + i_g * g_g
        h = o_g * jnp.tanh(c)

        z = jnp.tanh(h @ params["pw1"] + params["pb1"])
        z = jnp.tanh(z @ params["pw2"] + params["pb2"])
        alpha = jax.nn.softplus(z @ params["pwa"] + params["pba"]) + 1.0
        beta = jax.nn.softplus(z @ params["pwb"] + params["pbb"]) + 1.0

        v = jnp.tanh(h @ params["vw1"] + params["vb1"])
        v = jnp.tanh(v @ params["vw2"] + params["vb2"])
        vals.append(v @ params["vw3"] + params["vb3"])

        u = (a3[t] - bias) / scale
        acts.append(u * scale + bias)
        lg = gammaln(alpha) + gammaln(beta) - gammaln(alpha + beta)
        logps.append(jnp.sum((alpha - 1) * jnp.log(u) + (beta - 1) * jnp.log(1 - u) - lg,
                             axis=-1, keepdims=True))
        ents.append(jnp.sum(lg - (alpha - 1) * digamma(alpha) - (beta - 1) * digamma(beta)
                            + (alpha + beta - 2) * digamma(alpha + beta),
                            axis=-1, keepdims=True))

    N = T * B
    return (jnp.concatenate(acts).reshape(N, O),
            jnp.concatenate(logps).reshape(N),
            jnp.concatenate(ents).reshape(N),
            jnp.concatenate(vals).reshape(N, 1),
            (h[None], c[None]))


# --------------------------------- main ---------------------------------------

if __name__ == "__main__":
    INPUT_DIM, OUTPUT_DIM = 8, 4
    HIDDEN_DIMS = (32, 32)
    RNN_HIDDEN = 32
    T, B = 4, 2                       # seq_len x num parallel sequences
    N = T * B

    key = jax.random.PRNGKey(0)
    k_p, k_x, k_a = jax.random.split(key, 3)

    action_high = jnp.ones((OUTPUT_DIM,), jnp.float32)
    action_low = -jnp.ones((OUTPUT_DIM,), jnp.float32)
    params = init_params(k_p, INPUT_DIM, OUTPUT_DIM, HIDDEN_DIMS, RNN_HIDDEN,
                         action_high, action_low)

    x = jax.random.normal(k_x, (N, INPUT_DIM), jnp.float32)
    a = jax.random.uniform(k_a, (N, OUTPUT_DIM), jnp.float32, -0.9, 0.9)
    done_mask = jnp.zeros((N,), jnp.float32).at[4].set(1.0)   # reset env0 at t=2
    rnn_state = (jnp.zeros((1, B, RNN_HIDDEN), jnp.float32),
                 jnp.zeros((1, B, RNN_HIDDEN), jnp.float32))

    # t_tile=2 -> 2 time-tiles in the grid, exercising the pipelined carry.
    fwd = jax.jit(functools.partial(forward, params, t_tile=2))
    act, logp, ent, val, (hN, cN) = jax.block_until_ready(
        fwd(x, rnn_state, done_mask, a))

    # correctness check against a pure-JAX reference
    r_act, r_logp, r_ent, r_val, (r_h, r_c) = reference_forward(
        params, x, rnn_state, done_mask, a)
    np.testing.assert_allclose(np.asarray(act), np.asarray(r_act), atol=1e-3, rtol=1e-3)
    np.testing.assert_allclose(np.asarray(logp), np.asarray(r_logp), atol=1e-3, rtol=1e-3)
    np.testing.assert_allclose(np.asarray(ent), np.asarray(r_ent), atol=1e-3, rtol=1e-3)
    np.testing.assert_allclose(np.asarray(val), np.asarray(r_val), atol=1e-3, rtol=1e-3)
    np.testing.assert_allclose(np.asarray(hN), np.asarray(r_h), atol=1e-3, rtol=1e-3)
    np.testing.assert_allclose(np.asarray(cN), np.asarray(r_c), atol=1e-3, rtol=1e-3)

    print("KERNEL_OK")
</pallas_src>

<mosaic_0001>
module attributes {stable_mosaic.version = 11 : i64} {
  func.func @_policy_kernel(%arg0: i32, %arg1: i32, %arg2: memref<1x1x16x8xf32, #tpu.memory_space<vmem>>, %arg3: memref<1x1x16x1xf32, #tpu.memory_space<vmem>>, %arg4: memref<1x1x16x4xf32, #tpu.memory_space<vmem>>, %arg5: memref<1x4xf32, #tpu.memory_space<vmem>>, %arg6: memref<1x4xf32, #tpu.memory_space<vmem>>, %arg7: memref<1x128xf32, #tpu.memory_space<vmem>>, %arg8: memref<1x8x32xf32, #tpu.memory_space<vmem>>, %arg9: memref<1x8x32xf32, #tpu.memory_space<vmem>>, %arg10: memref<8x128xf32, #tpu.memory_space<vmem>>, %arg11: memref<32x128xf32, #tpu.memory_space<vmem>>, %arg12: memref<1x128xf32, #tpu.memory_space<vmem>>, %arg13: memref<32x64xf32, #tpu.memory_space<vmem>>, %arg14: memref<1x64xf32, #tpu.memory_space<vmem>>, %arg15: memref<64x64xf32, #tpu.memory_space<vmem>>, %arg16: memref<1x64xf32, #tpu.memory_space<vmem>>, %arg17: memref<64x9xf32, #tpu.memory_space<vmem>>, %arg18: memref<1x9xf32, #tpu.memory_space<vmem>>, %arg19: memref<1x1x16x8xf32, #tpu.memory_space<vmem>>, %arg20: memref<1x8x32xf32, #tpu.memory_space<vmem>>, %arg21: memref<1x8x32xf32, #tpu.memory_space<vmem>>, %arg22: memref<8x32xf32, #tpu.memory_space<vmem>>, %arg23: memref<8x32xf32, #tpu.memory_space<vmem>>, %arg24: memref<16x32xf32, #tpu.memory_space<vmem>>) attributes {dimension_semantics = [#tpu.dimension_semantics<parallel>, #tpu.dimension_semantics<arbitrary>], iteration_bounds = array<i64: 1, 2>, scalar_prefetch = 0 : i64, scratch_operands = 3 : i64, tpu.core_type = #tpu.core_type<tc>, window_params = [{transform_indices = @transform_0, window_bounds = array<i64: 1, 1, 16, 8>}, {transform_indices = @transform_1, window_bounds = array<i64: 1, 1, 16, 1>}, {transform_indices = @transform_2, window_bounds = array<i64: 1, 1, 16, 4>}, {pipeline_mode = #tpu.pipeline_mode<synchronous>, transform_indices = @transform_3, window_bounds = array<i64: 1, 4>}, {pipeline_mode = #tpu.pipeline_mode<synchronous>, transform_indices = @transform_4, window_bounds = array<i64: 1, 4>}, {pipeline_mode = #tpu.pipeline_mode<synchronous>, transform_indices = @transform_5, window_bounds = array<i64: 1, 128>}, {transform_indices = @transform_6, window_bounds = array<i64: 1, 8, 32>}, {transform_indices = @transform_7, window_bounds = array<i64: 1, 8, 32>}, {pipeline_mode = #tpu.pipeline_mode<synchronous>, transform_indices = @transform_8, window_bounds = array<i64: 8, 128>}, {pipeline_mode = #tpu.pipeline_mode<synchronous>, transform_indices = @transform_9, window_bounds = array<i64: 32, 128>}, {pipeline_mode = #tpu.pipeline_mode<synchronous>, transform_indices = @transform_10, window_bounds = array<i64: 1, 128>}, {pipeline_mode = #tpu.pipeline_mode<synchronous>, transform_indices = @transform_11, window_bounds = array<i64: 32, 64>}, {pipeline_mode = #tpu.pipeline_mode<synchronous>, transform_indices = @transform_12, window_bounds = array<i64: 1, 64>}, {pipeline_mode = #tpu.pipeline_mode<synchronous>, transform_indices = @transform_13, window_bounds = array<i64: 64, 64>}, {pipeline_mode = #tpu.pipeline_mode<synchronous>, transform_indices = @transform_14, window_bounds = array<i64: 1, 64>}, {pipeline_mode = #tpu.pipeline_mode<synchronous>, transform_indices = @transform_15, window_bounds = array<i64: 64, 9>}, {pipeline_mode = #tpu.pipeline_mode<synchronous>, transform_indices = @transform_16, window_bounds = array<i64: 1, 9>}, {transform_indices = @transform_17, window_bounds = array<i64: 1, 1, 16, 8>}, {transform_indices = @transform_18, window_bounds = array<i64: 1, 8, 32>}, {transform_indices = @transform_19, window_bounds = array<i64: 1, 8, 32>}]} {
    %c0_i32 = arith.constant 0 : i32
    %0 = arith.cmpi eq, %arg1, %c0_i32 : i32
    %1 = arith.extui %0 : i1 to i32
    %c0_i32_0 = arith.constant 0 : i32
    %2 = arith.cmpi ne, %1, %c0_i32_0 : i32
    scf.if %2 {
      %c0_99 = arith.constant 0 : index
      %c0_100 = arith.constant 0 : index
      %c0_101 = arith.constant 0 : index
      %240 = vector.load %arg8[%c0_99, %c0_100, %c0_101] : memref<1x8x32xf32, #tpu.memory_space<vmem>>, vector<1x8x32xf32>
      %241 = vector.shape_cast %240 : vector<1x8x32xf32> to vector<8x32xf32>
      %c0_102 = arith.constant 0 : index
      %c0_103 = arith.constant 0 : index
      %242 = vector.load %arg22[%c0_102, %c0_103] : memref<8x32xf32, #tpu.memory_space<vmem>>, vector<8x32xf32>
      tpu.vector_store %arg22[%c0_102, %c0_103], %241 {strides = array<i32>} : memref<8x32xf32, #tpu.memory_space<vmem>>, vector<8x32xf32>,
      %c0_104 = arith.constant 0 : index
      %c0_105 = arith.constant 0 : index
      %c0_106 = arith.constant 0 : index
      %243 = vector.load %arg9[%c0_104, %c0_105, %c0_106] : memref<1x8x32xf32, #tpu.memory_space<vmem>>, vector<1x8x32xf32>
      %244 = vector.shape_cast %243 : vector<1x8x32xf32> to vector<8x32xf32>
      %c0_107 = arith.constant 0 : index
      %c0_108 = arith.constant 0 : index
      %245 = vector.load %arg23[%c0_107, %c0_108] : memref<8x32xf32, #tpu.memory_space<vmem>>, vector<8x32xf32>
      tpu.vector_store %arg23[%c0_107, %c0_108], %244 {strides = array<i32>} : memref<8x32xf32, #tpu.memory_space<vmem>>, vector<8x32xf32>,
    } else {
    }
    %c0 = arith.constant 0 : index
    %c0_1 = arith.constant 0 : index
    %c0_2 = arith.constant 0 : index
    %c0_3 = arith.constant 0 : index
    %3 = vector.load %arg2[%c0, %c0_1, %c0_2, %c0_3] : memref<1x1x16x8xf32, #tpu.memory_space<vmem>>, vector<1x1x16x8xf32>
    %4 = vector.shape_cast %3 : vector<1x1x16x8xf32> to vector<16x8xf32>
    %c0_4 = arith.constant 0 : index
    %c0_5 = arith.constant 0 : index
    %5 = vector.load %arg10[%c0_4, %c0_5] : memref<8x128xf32, #tpu.memory_space<vmem>>, vector<8x128xf32>
    %cst = arith.constant dense<0.000000e+00> : vector<16x128xf32>
    %6 = tpu.matmul %4, %5, %cst {dimension_numbers = #tpu.dot_dimension_numbers<[1], [0], [0], [1], [0, 0, 1, 1], [], []>} : vector<16x8xf32>, vector<8x128xf32>, vector<16x128xf32> -> vector<16x128xf32>
    %c0_6 = arith.constant 0 : index
    %c0_7 = arith.constant 0 : index
    %7 = vector.load %arg12[%c0_6, %c0_7] : memref<1x128xf32, #tpu.memory_space<vmem>>, vector<1x128xf32>
    %8 = vector.broadcast %7 : vector<1x128xf32> to vector<16x128xf32>
    %9 = arith.addf %6, %8 : vector<16x128xf32>
    %c0_8 = arith.constant 0 : index
    %c0_9 = arith.constant 0 : index
    %10 = vector.load %arg7[%c0_8, %c0_9] : memref<1x128xf32, #tpu.memory_space<vmem>>, vector<1x128xf32>
    %cst_10 = arith.constant 1.000000e+00 : f32
    %11 = vector.broadcast %cst_10 : f32 to vector<1x128xf32>
    %12 = arith.subf %11, %10 : vector<1x128xf32>
    %c0_11 = arith.constant 0 : index
    %c0_12 = arith.constant 0 : index
    %13 = vector.load %arg11[%c0_11, %c0_12] : memref<32x128xf32, #tpu.memory_space<vmem>>, vector<32x128xf32>
    %c0_13 = arith.constant 0 : index
    %c0_14 = arith.constant 0 : index
    %c0_15 = arith.constant 0 : index
    %c0_16 = arith.constant 0 : index
    %14 = vector.load %arg3[%c0_13, %c0_14, %c0_15, %c0_16] : memref<1x1x16x1xf32, #tpu.memory_space<vmem>>, vector<1x1x16x1xf32>
    %15 = vector.shape_cast %14 : vector<1x1x16x1xf32> to vector<16x1xf32>
    %16 = vector.shape_cast %15 : vector<16x1xf32> to vector<16x1xf32>
    %17 = vector.broadcast %16 : vector<16x1xf32> to vector<16x32xf32>
    %c0_17 = arith.constant 0 : index
    %c0_18 = arith.constant 0 : index
    %18 = vector.load %arg22[%c0_17, %c0_18] : memref<8x32xf32, #tpu.memory_space<vmem>>, vector<8x32xf32>
    %c0_19 = arith.constant 0 : index
    %c0_20 = arith.constant 0 : index
    %19 = vector.load %arg23[%c0_19, %c0_20] : memref<8x32xf32, #tpu.memory_space<vmem>>, vector<8x32xf32>
    %20 = vector.extract_strided_slice %17 {offsets = [0, 0], sizes = [8, 32], strides = [1, 1]} : vector<16x32xf32> to vector<8x32xf32>
    %21 = arith.mulf %20, %18 : vector<8x32xf32>
    %22 = arith.mulf %20, %19 : vector<8x32xf32>
    %23 = vector.extract_strided_slice %9 {offsets = [0, 0], sizes = [8, 128], strides = [1, 1]} : vector<16x128xf32> to vector<8x128xf32>
    %cst_21 = arith.constant dense<0.000000e+00> : vector<8x128xf32>
    %24 = tpu.matmul %21, %13, %cst_21 {dimension_numbers = #tpu.dot_dimension_numbers<[1], [0], [0], [1], [0, 0, 1, 1], [], []>} : vector<8x32xf32>, vector<32x128xf32>, vector<8x128xf32> -> vector<8x128xf32>
    %25 = arith.addf %23, %24 : vector<8x128xf32>
    %26 = vector.broadcast %10 : vector<1x128xf32> to vector<8x128xf32>
    %27 = arith.mulf %26, %25 : vector<8x128xf32>
    %28 = math.tanh %27 : vector<8x128xf32>
    %29 = vector.broadcast %10 : vector<1x128xf32> to vector<8x128xf32>
    %30 = arith.mulf %29, %28 : vector<8x128xf32>
    %31 = vector.broadcast %12 : vector<1x128xf32> to vector<8x128xf32>
    %32 = arith.addf %30, %31 : vector<8x128xf32>
    %33 = vector.extract_strided_slice %32 {offsets = [0, 0], sizes = [8, 32], strides = [1, 1]} : vector<8x128xf32> to vector<8x32xf32>
    %34 = vector.extract_strided_slice %32 {offsets = [0, 32], sizes = [8, 32], strides = [1, 1]} : vector<8x128xf32> to vector<8x32xf32>
    %35 = vector.extract_strided_slice %32 {offsets = [0, 64], sizes = [8, 32], strides = [1, 1]} : vector<8x128xf32> to vector<8x32xf32>
    %36 = vector.extract_strided_slice %32 {offsets = [0, 96], sizes = [8, 32], strides = [1, 1]} : vector<8x128xf32> to vector<8x32xf32>
    %37 = arith.mulf %34, %22 : vector<8x32xf32>
    %38 = arith.mulf %33, %35 : vector<8x32xf32>
    %39 = arith.addf %37, %38 : vector<8x32xf32>
    %40 = math.tanh %39 : vector<8x32xf32>
    %41 = arith.mulf %36, %40 : vector<8x32xf32>
    %c0_22 = arith.constant 0 : index
    %c0_23 = arith.constant 0 : index
    %42 = vector.load %arg24[%c0_22, %c0_23] : memref<16x32xf32, #tpu.memory_space<vmem>>, vector<8x32xf32>
    tpu.vector_store %arg24[%c0_22, %c0_23], %41 {strides = array<i32>} : memref<16x32xf32, #tpu.memory_space<vmem>>, vector<8x32xf32>,
    %43 = vector.extract_strided_slice %17 {offsets = [8, 0], sizes = [8, 32], strides = [1, 1]} : vector<16x32xf32> to vector<8x32xf32>
    %44 = arith.mulf %43, %41 : vector<8x32xf32>
    %45 = arith.mulf %43, %39 : vector<8x32xf32>
    %46 = vector.extract_strided_slice %9 {offsets = [8, 0], sizes = [8, 128], strides = [1, 1]} : vector<16x128xf32> to vector<8x128xf32>
    %cst_24 = arith.constant dense<0.000000e+00> : vector<8x128xf32>
    %47 = tpu.matmul %44, %13, %cst_24 {dimension_numbers = #tpu.dot_dimension_numbers<[1], [0], [0], [1], [0, 0, 1, 1], [], []>} : vector<8x32xf32>, vector<32x128xf32>, vector<8x128xf32> -> vector<8x128xf32>
    %48 = arith.addf %46, %47 : vector<8x128xf32>
    %49 = vector.broadcast %10 : vector<1x128xf32> to vector<8x128xf32>
    %50 = arith.mulf %49, %48 : vector<8x128xf32>
    %51 = math.tanh %50 : vector<8x128xf32>
    %52 = vector.broadcast %10 : vector<1x128xf32> to vector<8x128xf32>
    %53 = arith.mulf %52, %51 : vector<8x128xf32>
    %54 = vector.broadcast %12 : vector<1x128xf32> to vector<8x128xf32>
    %55 = arith.addf %53, %54 : vector<8x128xf32>
    %56 = vector.extract_strided_slice %55 {offsets = [0, 0], sizes = [8, 32], strides = [1, 1]} : vector<8x128xf32> to vector<8x32xf32>
    %57 = vector.extract_strided_slice %55 {offsets = [0, 32], sizes = [8, 32], strides = [1, 1]} : vector<8x128xf32> to vector<8x32xf32>
    %58 = vector.extract_strided_slice %55 {offsets = [0, 64], sizes = [8, 32], strides = [1, 1]} : vector<8x128xf32> to vector<8x32xf32>
    %59 = vector.extract_strided_slice %55 {offsets = [0, 96], sizes = [8, 32], strides = [1, 1]} : vector<8x128xf32> to vector<8x32xf32>
    %60 = arith.mulf %57, %45 : vector<8x32xf32>
    %61 = arith.mulf %56, %58 : vector<8x32xf32>
    %62 = arith.addf %60, %61 : vector<8x32xf32>
    %63 = math.tanh %62 : vector<8x32xf32>
    %64 = arith.mulf %59, %63 : vector<8x32xf32>
    %c8 = arith.constant 8 : index
    %c0_25 = arith.constant 0 : index
    %65 = vector.load %arg24[%c8, %c0_25] : memref<16x32xf32, #tpu.memory_space<vmem>>, vector<8x32xf32>
    tpu.vector_store %arg24[%c8, %c0_25], %64 {strides = array<i32>} : memref<16x32xf32, #tpu.memory_space<vmem>>, vector<8x32xf32>,
    %c0_26 = arith.constant 0 : index
    %c0_27 = arith.constant 0 : index
    %66 = vector.load %arg22[%c0_26, %c0_27] : memref<8x32xf32, #tpu.memory_space<vmem>>, vector<8x32xf32>
    tpu.vector_store %arg22[%c0_26, %c0_27], %64 {strides = array<i32>} : memref<8x32xf32, #tpu.memory_space<vmem>>, vector<8x32xf32>,
    %c0_28 = arith.constant 0 : index
    %c0_29 = arith.constant 0 : index
    %67 = vector.load %arg23[%c0_28, %c0_29] : memref<8x32xf32, #tpu.memory_space<vmem>>, vector<8x32xf32>
    tpu.vector_store %arg23[%c0_28, %c0_29], %62 {strides = array<i32>} : memref<8x32xf32, #tpu.memory_space<vmem>>, vector<8x32xf32>,
    %c0_30 = arith.constant 0 : index
    %c0_31 = arith.constant 0 : index
    %c0_32 = arith.constant 0 : index
    %68 = vector.load %arg20[%c0_30, %c0_31, %c0_32] : memref<1x8x32xf32, #tpu.memory_space<vmem>>, vector<1x8x32xf32>
    %69 = vector.shape_cast %68 : vector<1x8x32xf32> to vector<8x32xf32>
    %70 = vector.shape_cast %64 : vector<8x32xf32> to vector<1x8x32xf32>
    tpu.vector_store %arg20[%c0_30, %c0_31, %c0_32], %70 {strides = array<i32>} : memref<1x8x32xf32, #tpu.memory_space<vmem>>, vector<1x8x32xf32>,
    %c0_33 = arith.constant 0 : index
    %c0_34 = arith.constant 0 : index
    %c0_35 = arith.constant 0 : index
    %71 = vector.load %arg21[%c0_33, %c0_34, %c0_35] : memref<1x8x32xf32, #tpu.memory_space<vmem>>, vector<1x8x32xf32>
    %72 = vector.shape_cast %71 : vector<1x8x32xf32> to vector<8x32xf32>
    %73 = vector.shape_cast %62 : vector<8x32xf32> to vector<1x8x32xf32>
    tpu.vector_store %arg21[%c0_33, %c0_34, %c0_35], %73 {strides = array<i32>} : memref<1x8x32xf32, #tpu.memory_space<vmem>>, vector<1x8x32xf32>,
    %c0_36 = arith.constant 0 : index
    %c0_37 = arith.constant 0 : index
    %74 = vector.load %arg24[%c0_36, %c0_37] : memref<16x32xf32, #tpu.memory_space<vmem>>, vector<16x32xf32>
    %c0_38 = arith.constant 0 : index
    %c0_39 = arith.constant 0 : index
    %75 = vector.load %arg13[%c0_38, %c0_39] : memref<32x64xf32, #tpu.memory_space<vmem>>, vector<32x64xf32>
    %cst_40 = arith.constant dense<0.000000e+00> : vector<16x64xf32>
    %76 = tpu.matmul %74, %75, %cst_40 {dimension_numbers = #tpu.dot_dimension_numbers<[1], [0], [0], [1], [0, 0, 1, 1], [], []>} : vector<16x32xf32>, vector<32x64xf32>, vector<16x64xf32> -> vector<16x64xf32>
    %c0_41 = arith.constant 0 : index
    %c0_42 = arith.constant 0 : index
    %77 = vector.load %arg14[%c0_41, %c0_42] : memref<1x64xf32, #tpu.memory_space<vmem>>, vector<1x64xf32>
    %78 = vector.broadcast %77 : vector<1x64xf32> to vector<16x64xf32>
    %79 = arith.addf %76, %78 : vector<16x64xf32>
    %80 = math.tanh %79 : vector<16x64xf32>
    %c0_43 = arith.constant 0 : index
    %c0_44 = arith.constant 0 : index
    %81 = vector.load %arg15[%c0_43, %c0_44] : memref<64x64xf32, #tpu.memory_space<vmem>>, vector<64x64xf32>
    %cst_45 = arith.constant dense<0.000000e+00> : vector<16x64xf32>
    %82 = tpu.matmul %80, %81, %cst_45 {dimension_numbers = #tpu.dot_dimension_numbers<[1], [0], [0], [1], [0, 0, 1, 1], [], []>} : vector<16x64xf32>, vector<64x64xf32>, vector<16x64xf32> -> vector<16x64xf32>
    %c0_46 = arith.constant 0 : index
    %c0_47 = arith.constant 0 : index
    %83 = vector.load %arg16[%c0_46, %c0_47] : memref<1x64xf32, #tpu.memory_space<vmem>>, vector<1x64xf32>
    %84 = vector.broadcast %83 : vector<1x64xf32> to vector<16x64xf32>
    %85 = arith.addf %82, %84 : vector<16x64xf32>
    %86 = math.tanh %85 : vector<16x64xf32>
    %c0_48 = arith.constant 0 : index
    %c0_49 = arith.constant 0 : index
    %87 = vector.load %arg17[%c0_48, %c0_49] : memref<64x9xf32, #tpu.memory_space<vmem>>, vector<64x9xf32>
    %cst_50 = arith.constant dense<0.000000e+00> : vector<16x9xf32>
    %88 = tpu.matmul %86, %87, %cst_50 {dimension_numbers = #tpu.dot_dimension_numbers<[1], [0], [0], [1], [0, 0, 1, 1], [], []>} : vector<16x64xf32>, vector<64x9xf32>, vector<16x9xf32> -> vector<16x9xf32>
    %c0_51 = arith.constant 0 : index
    %c0_52 = arith.constant 0 : index
    %89 = vector.load %arg18[%c0_51, %c0_52] : memref<1x9xf32, #tpu.memory_space<vmem>>, vector<1x9xf32>
    %90 = vector.broadcast %89 : vector<1x9xf32> to vector<16x9xf32>
    %91 = arith.addf %88, %90 : vector<16x9xf32>
    %92 = vector.extract_strided_slice %91 {offsets = [0, 0], sizes = [16, 4], strides = [1, 1]} : vector<16x9xf32> to vector<16x4xf32>
    %cst_53 = arith.constant 0.000000e+00 : f32
    %93 = vector.broadcast %cst_53 : f32 to vector<16x4xf32>
    %94 = arith.maximumf %92, %93 : vector<16x4xf32>
    %95 = math.absf %92 : vector<16x4xf32>
    %cst_54 = arith.constant 0.000000e+00 : f32
    %96 = vector.broadcast %cst_54 : f32 to vector<16x4xf32>
    %97 = arith.subf %96, %95 : vector<16x4xf32>
    %98 = math.exp %97 : vector<16x4xf32>
    %cst_55 = arith.constant 1.000000e+00 : f32
    %99 = vector.broadcast %cst_55 : f32 to vector<16x4xf32>
    %100 = arith.addf %99, %98 : vector<16x4xf32>
    %101 = math.log %100 : vector<16x4xf32>
    %102 = arith.addf %94, %101 : vector<16x4xf32>
    %cst_56 = arith.constant 1.000000e+00 : f32
    %103 = vector.broadcast %cst_56 : f32 to vector<16x4xf32>
    %104 = arith.addf %102, %103 : vector<16x4xf32>
    %105 = vector.extract_strided_slice %91 {offsets = [0, 4], sizes = [16, 4], strides = [1, 1]} : vector<16x9xf32> to vector<16x4xf32>
    %cst_57 = arith.constant 0.000000e+00 : f32
    %106 = vector.broadcast %cst_57 : f32 to vector<16x4xf32>
    %107 = arith.maximumf %105, %106 : vector<16x4xf32>
    %108 = math.absf %105 : vector<16x4xf32>
    %cst_58 = arith.constant 0.000000e+00 : f32
    %109 = vector.broadcast %cst_58 : f32 to vector<16x4xf32>
    %110 = arith.subf %109, %108 : vector<16x4xf32>
    %111 = math.exp %110 : vector<16x4xf32>
    %cst_59 = arith.constant 1.000000e+00 : f32
    %112 = vector.broadcast %cst_59 : f32 to vector<16x4xf32>
    %113 = arith.addf %112, %111 : vector<16x4xf32>
    %114 = math.log %113 : vector<16x4xf32>
    %115 = arith.addf %107, %114 : vector<16x4xf32>
    %cst_60 = arith.constant 1.000000e+00 : f32
    %116 = vector.broadcast %cst_60 : f32 to vector<16x4xf32>
    %117 = arith.addf %115, %116 : vector<16x4xf32>
    %118 = vector.extract_strided_slice %91 {offsets = [0, 8], sizes = [16, 1], strides = [1, 1]} : vector<16x9xf32> to vector<16x1xf32>
    %c0_61 = arith.constant 0 : index
    %c0_62 = arith.constant 0 : index
    %c0_63 = arith.constant 0 : index
    %c0_64 = arith.constant 0 : index
    %119 = vector.load %arg4[%c0_61, %c0_62, %c0_63, %c0_64] : memref<1x1x16x4xf32, #tpu.memory_space<vmem>>, vector<1x1x16x4xf32>
    %120 = vector.shape_cast %119 : vector<1x1x16x4xf32> to vector<16x4xf32>
    %c0_65 = arith.constant 0 : index
    %c0_66 = arith.constant 0 : index
    %121 = vector.load %arg6[%c0_65, %c0_66] : memref<1x4xf32, #tpu.memory_space<vmem>>, vector<1x4xf32>
    %122 = vector.broadcast %121 : vector<1x4xf32> to vector<16x4xf32>
    %123 = arith.subf %120, %122 : vector<16x4xf32>
    %c0_67 = arith.constant 0 : index
    %c0_68 = arith.constant 0 : index
    %124 = vector.load %arg5[%c0_67, %c0_68] : memref<1x4xf32, #tpu.memory_space<vmem>>, vector<1x4xf32>
    %125 = vector.broadcast %124 : vector<1x4xf32> to vector<16x4xf32>
    %126 = arith.mulf %123, %125 : vector<16x4xf32>
    %127 = arith.addf %104, %117 : vector<16x4xf32>
    %128 = tpu.concatenate %104, %117, %127 in 1 : vector<16x4xf32>, vector<16x4xf32>, vector<16x4xf32> -> vector<16x12xf32>
    %cst_69 = arith.constant 1.000000e+00 : f32
    %129 = vector.broadcast %cst_69 : f32 to vector<16x12xf32>
    %130 = arith.addf %128, %129 : vector<16x12xf32>
    %cst_70 = arith.constant 2.000000e+00 : f32
    %131 = vector.broadcast %cst_70 : f32 to vector<16x12xf32>
    %132 = arith.addf %128, %131 : vector<16x12xf32>
    %cst_71 = arith.constant 3.000000e+00 : f32
    %133 = vector.broadcast %cst_71 : f32 to vector<16x12xf32>
    %134 = arith.addf %128, %133 : vector<16x12xf32>
    %cst_72 = arith.constant 4.000000e+00 : f32
    %135 = vector.broadcast %cst_72 : f32 to vector<16x12xf32>
    %136 = arith.addf %128, %135 : vector<16x12xf32>
    %cst_73 = arith.constant 5.000000e+00 : f32
    %137 = vector.broadcast %cst_73 : f32 to vector<16x12xf32>
    %138 = arith.addf %128, %137 : vector<16x12xf32>
    %139 = arith.mulf %128, %130 : vector<16x12xf32>
    %140 = arith.mulf %139, %132 : vector<16x12xf32>
    %141 = arith.mulf %140, %134 : vector<16x12xf32>
    %142 = arith.mulf %141, %136 : vector<16x12xf32>
    %143 = arith.mulf %136, %138 : vector<16x12xf32>
    %144 = arith.mulf %134, %143 : vector<16x12xf32>
    %145 = arith.mulf %132, %144 : vector<16x12xf32>
    %146 = arith.mulf %130, %145 : vector<16x12xf32>
    %147 = arith.mulf %142, %138 : vector<16x12xf32>
    %148 = arith.mulf %128, %145 : vector<16x12xf32>
    %149 = arith.addf %146, %148 : vector<16x12xf32>
    %150 = arith.mulf %139, %144 : vector<16x12xf32>
    %151 = arith.addf %149, %150 : vector<16x12xf32>
    %152 = arith.mulf %140, %143 : vector<16x12xf32>
    %153 = arith.addf %151, %152 : vector<16x12xf32>
    %154 = arith.mulf %141, %138 : vector<16x12xf32>
    %155 = arith.addf %153, %154 : vector<16x12xf32>
    %156 = arith.addf %155, %142 : vector<16x12xf32>
    %cst_74 = arith.constant 6.000000e+00 : f32
    %157 = vector.broadcast %cst_74 : f32 to vector<16x12xf32>
    %158 = arith.addf %128, %157 : vector<16x12xf32>
    %cst_75 = arith.constant 1.000000e+00 : f32
    %159 = vector.broadcast %cst_75 : f32 to vector<16x12xf32>
    %160 = arith.divf %159, %158 : vector<16x12xf32>
    %161 = arith.mulf %160, %160 : vector<16x12xf32>
    %162 = math.log %158 : vector<16x12xf32>
    %163 = math.log %147 : vector<16x12xf32>
    %cst_76 = arith.constant 5.000000e-01 : f32
    %164 = vector.broadcast %cst_76 : f32 to vector<16x12xf32>
    %165 = arith.subf %158, %164 : vector<16x12xf32>
    %166 = arith.mulf %165, %162 : vector<16x12xf32>
    %167 = arith.subf %166, %158 : vector<16x12xf32>
    %cst_77 = arith.constant 6.28318548 : f32
    %168 = math.log %cst_77 : f32
    %cst_78 = arith.constant 5.000000e-01 : f32
    %169 = arith.mulf %cst_78, %168 : f32
    %170 = vector.broadcast %169 : f32 to vector<16x12xf32>
    %171 = arith.addf %167, %170 : vector<16x12xf32>
    %cst_79 = arith.constant 7.93650805E-4 : f32
    %172 = vector.broadcast %cst_79 : f32 to vector<16x12xf32>
    %173 = arith.mulf %161, %172 : vector<16x12xf32>
    %cst_80 = arith.constant 0.00277777785 : f32
    %174 = vector.broadcast %cst_80 : f32 to vector<16x12xf32>
    %175 = arith.subf %174, %173 : vector<16x12xf32>
    %176 = arith.mulf %161, %175 : vector<16x12xf32>
    %cst_81 = arith.constant 0.0833333358 : f32
    %177 = vector.broadcast %cst_81 : f32 to vector<16x12xf32>
    %178 = arith.subf %177, %176 : vector<16x12xf32>
    %179 = arith.mulf %160, %178 : vector<16x12xf32>
    %180 = arith.addf %171, %179 : vector<16x12xf32>
    %181 = arith.subf %180, %163 : vector<16x12xf32>
    %cst_82 = arith.constant 5.000000e-01 : f32
    %182 = vector.broadcast %cst_82 : f32 to vector<16x12xf32>
    %183 = arith.mulf %182, %160 : vector<16x12xf32>
    %184 = arith.subf %162, %183 : vector<16x12xf32>
    %cst_83 = arith.constant 0.0039682542 : f32
    %185 = vector.broadcast %cst_83 : f32 to vector<16x12xf32>
    %186 = arith.mulf %161, %185 : vector<16x12xf32>
    %cst_84 = arith.constant 0.00833333377 : f32
    %187 = vector.broadcast %cst_84 : f32 to vector<16x12xf32>
    %188 = arith.subf %187, %186 : vector<16x12xf32>
    %189 = arith.mulf %161, %188 : vector<16x12xf32>
    %cst_85 = arith.constant 0.0833333358 : f32
    %190 = vector.broadcast %cst_85 : f32 to vector<16x12xf32>
    %191 = arith.subf %190, %189 : vector<16x12xf32>
    %192 = arith.mulf %161, %191 : vector<16x12xf32>
    %193 = arith.subf %184, %192 : vector<16x12xf32>
    %194 = arith.divf %156, %147 : vector<16x12xf32>
    %195 = arith.subf %193, %194 : vector<16x12xf32>
    %196 = vector.extract_strided_slice %181 {offsets = [0, 0], sizes = [16, 4], strides = [1, 1]} : vector<16x12xf32> to vector<16x4xf32>
    %197 = vector.extract_strided_slice %181 {offsets = [0, 4], sizes = [16, 4], strides = [1, 1]} : vector<16x12xf32> to vector<16x4xf32>
    %198 = vector.extract_strided_slice %181 {offsets = [0, 8], sizes = [16, 4], strides = [1, 1]} : vector<16x12xf32> to vector<16x4xf32>
    %199 = vector.extract_strided_slice %195 {offsets = [0, 0], sizes = [16, 4], strides = [1, 1]} : vector<16x12xf32> to vector<16x4xf32>
    %200 = vector.extract_strided_slice %195 {offsets = [0, 4], sizes = [16, 4], strides = [1, 1]} : vector<16x12xf32> to vector<16x4xf32>
    %201 = vector.extract_strided_slice %195 {offsets = [0, 8], sizes = [16, 4], strides = [1, 1]} : vector<16x12xf32> to vector<16x4xf32>
    %cst_86 = arith.constant 1.000000e+00 : f32
    %202 = vector.broadcast %cst_86 : f32 to vector<16x4xf32>
    %203 = arith.subf %104, %202 : vector<16x4xf32>
    %204 = math.log %126 : vector<16x4xf32>
    %205 = arith.mulf %203, %204 : vector<16x4xf32>
    %cst_87 = arith.constant 1.000000e+00 : f32
    %206 = vector.broadcast %cst_87 : f32 to vector<16x4xf32>
    %207 = arith.subf %117, %206 : vector<16x4xf32>
    %cst_88 = arith.constant 1.000000e+00 : f32
    %208 = vector.broadcast %cst_88 : f32 to vector<16x4xf32>
    %209 = arith.subf %208, %126 : vector<16x4xf32>
    %210 = math.log %209 : vector<16x4xf32>
    %211 = arith.mulf %207, %210 : vector<16x4xf32>
    %212 = arith.addf %205, %211 : vector<16x4xf32>
    %213 = arith.subf %212, %196 : vector<16x4xf32>
    %214 = arith.subf %213, %197 : vector<16x4xf32>
    %215 = arith.addf %214, %198 : vector<16x4xf32>
    %cst_89 = arith.constant dense<0.000000e+00> : vector<16xf32>
    %216 = vector.multi_reduction <add>, %215, %cst_89 [1] : vector<16x4xf32> to vector<16xf32>
    %217 = vector.shape_cast %216 : vector<16xf32> to vector<16x1xf32>
    %218 = arith.addf %196, %197 : vector<16x4xf32>
    %219 = arith.subf %218, %198 : vector<16x4xf32>
    %cst_90 = arith.constant 1.000000e+00 : f32
    %220 = vector.broadcast %cst_90 : f32 to vector<16x4xf32>
    %221 = arith.subf %104, %220 : vector<16x4xf32>
    %222 = arith.mulf %221, %199 : vector<16x4xf32>
    %223 = arith.subf %219, %222 : vector<16x4xf32>
    %cst_91 = arith.constant 1.000000e+00 : f32
    %224 = vector.broadcast %cst_91 : f32 to vector<16x4xf32>
    %225 = arith.subf %117, %224 : vector<16x4xf32>
    %226 = arith.mulf %225, %200 : vector<16x4xf32>
    %227 = arith.subf %223, %226 : vector<16x4xf32>
    %228 = arith.addf %104, %117 : vector<16x4xf32>
    %cst_92 = arith.constant 2.000000e+00 : f32
    %229 = vector.broadcast %cst_92 : f32 to vector<16x4xf32>
    %230 = arith.subf %228, %229 : vector<16x4xf32>
    %231 = arith.mulf %230, %201 : vector<16x4xf32>
    %232 = arith.addf %227, %231 : vector<16x4xf32>
    %cst_93 = arith.constant dense<0.000000e+00> : vector<16xf32>
    %233 = vector.multi_reduction <add>, %232, %cst_93 [1] : vector<16x4xf32> to vector<16xf32>
    %234 = vector.shape_cast %233 : vector<16xf32> to vector<16x1xf32>
    %cst_94 = arith.constant 0.000000e+00 : f32
    %235 = vector.broadcast %cst_94 : f32 to vector<16x5xf32>
    %236 = tpu.concatenate %217, %234, %118, %235 in 1 : vector<16x1xf32>, vector<16x1xf32>, vector<16x1xf32>, vector<16x5xf32> -> vector<16x8xf32>
    %c0_95 = arith.constant 0 : index
    %c0_96 = arith.constant 0 : index
    %c0_97 = arith.constant 0 : index
    %c0_98 = arith.constant 0 : index
    %237 = vector.load %arg19[%c0_95, %c0_96, %c0_97, %c0_98] : memref<1x1x16x8xf32, #tpu.memory_space<vmem>>, vector<1x1x16x8xf32>
    %238 = vector.shape_cast %237 : vector<1x1x16x8xf32> to vector<16x8xf32>
    %239 = vector.shape_cast %236 : vector<16x8xf32> to vector<1x1x16x8xf32>
    tpu.vector_store %arg19[%c0_95, %c0_96, %c0_97, %c0_98], %239 {strides = array<i32>} : memref<1x1x16x8xf32, #tpu.memory_space<vmem>>, vector<1x1x16x8xf32>,
    return
  }
  func.func @transform_0(%arg0: i32, %arg1: i32) -> (i32, i32, i32, i32) {
    %c0_i32 = arith.constant 0 : i32
    %c0_i32_0 = arith.constant 0 : i32
    %c0_i32_1 = arith.constant 0 : i32
    return %arg1, %arg0, %c0_i32, %c0_i32_0 : i32, i32, i32, i32
  }
  func.func @transform_1(%arg0: i32, %arg1: i32) -> (i32, i32, i32, i32) {
    %c0_i32 = arith.constant 0 : i32
    %c0_i32_0 = arith.constant 0 : i32
    %c0_i32_1 = arith.constant 0 : i32
    return %arg1, %arg0, %c0_i32, %c0_i32_0 : i32, i32, i32, i32
  }
  func.func @transform_2(%arg0: i32, %arg1: i32) -> (i32, i32, i32, i32) {
    %c0_i32 = arith.constant 0 : i32
    %c0_i32_0 = arith.constant 0 : i32
    %c0_i32_1 = arith.constant 0 : i32
    return %arg1, %arg0, %c0_i32, %c0_i32_0 : i32, i32, i32, i32
  }
  func.func @transform_3(%arg0: i32, %arg1: i32) -> (i32, i32) {
    %c0_i32 = arith.constant 0 : i32
    %c0_i32_0 = arith.constant 0 : i32
    %c0_i32_1 = arith.constant 0 : i32
    return %c0_i32, %c0_i32_0 : i32, i32
  }
  func.func @transform_4(%arg0: i32, %arg1: i32) -> (i32, i32) {
    %c0_i32 = arith.constant 0 : i32
    %c0_i32_0 = arith.constant 0 : i32
    %c0_i32_1 = arith.constant 0 : i32
    return %c0_i32, %c0_i32_0 : i32, i32
  }
  func.func @transform_5(%arg0: i32, %arg1: i32) -> (i32, i32) {
    %c0_i32 = arith.constant 0 : i32
    %c0_i32_0 = arith.constant 0 : i32
    %c0_i32_1 = arith.constant 0 : i32
    return %c0_i32, %c0_i32_0 : i32, i32
  }
  func.func @transform_6(%arg0: i32, %arg1: i32) -> (i32, i32, i32) {
    %c0_i32 = arith.constant 0 : i32
    %c0_i32_0 = arith.constant 0 : i32
    %c0_i32_1 = arith.constant 0 : i32
    return %arg0, %c0_i32, %c0_i32_0 : i32, i32, i32
  }
  func.func @transform_7(%arg0: i32, %arg1: i32) -> (i32, i32, i32) {
    %c0_i32 = arith.constant 0 : i32
    %c0_i32_0 = arith.constant 0 : i32
    %c0_i32_1 = arith.constant 0 : i32
    return %arg0, %c0_i32, %c0_i32_0 : i32, i32, i32
  }
  func.func @transform_8(%arg0: i32, %arg1: i32) -> (i32, i32) {
    %c0_i32 = arith.constant 0 : i32
    %c0_i32_0 = arith.constant 0 : i32
    %c0_i32_1 = arith.constant 0 : i32
    return %c0_i32, %c0_i32_0 : i32, i32
  }
  func.func @transform_9(%arg0: i32, %arg1: i32) -> (i32, i32) {
    %c0_i32 = arith.constant 0 : i32
    %c0_i32_0 = arith.constant 0 : i32
    %c0_i32_1 = arith.constant 0 : i32
    return %c0_i32, %c0_i32_0 : i32, i32
  }
  func.func @transform_10(%arg0: i32, %arg1: i32) -> (i32, i32) {
    %c0_i32 = arith.constant 0 : i32
    %c0_i32_0 = arith.constant 0 : i32
    %c0_i32_1 = arith.constant 0 : i32
    return %c0_i32, %c0_i32_0 : i32, i32
  }
  func.func @transform_11(%arg0: i32, %arg1: i32) -> (i32, i32) {
    %c0_i32 = arith.constant 0 : i32
    %c0_i32_0 = arith.constant 0 : i32
    %c0_i32_1 = arith.constant 0 : i32
    return %c0_i32, %c0_i32_0 : i32, i32
  }
  func.func @transform_12(%arg0: i32, %arg1: i32) -> (i32, i32) {
    %c0_i32 = arith.constant 0 : i32
    %c0_i32_0 = arith.constant 0 : i32
    %c0_i32_1 = arith.constant 0 : i32
    return %c0_i32, %c0_i32_0 : i32, i32
  }
  func.func @transform_13(%arg0: i32, %arg1: i32) -> (i32, i32) {
    %c0_i32 = arith.constant 0 : i32
    %c0_i32_0 = arith.constant 0 : i32
    %c0_i32_1 = arith.constant 0 : i32
    return %c0_i32, %c0_i32_0 : i32, i32
  }
  func.func @transform_14(%arg0: i32, %arg1: i32) -> (i32, i32) {
    %c0_i32 = arith.constant 0 : i32
    %c0_i32_0 = arith.constant 0 : i32
    %c0_i32_1 = arith.constant 0 : i32
    return %c0_i32, %c0_i32_0 : i32, i32
  }
  func.func @transform_15(%arg0: i32, %arg1: i32) -> (i32, i32) {
    %c0_i32 = arith.constant 0 : i32
    %c0_i32_0 = arith.constant 0 : i32
    %c0_i32_1 = arith.constant 0 : i32
    return %c0_i32, %c0_i32_0 : i32, i32
  }
  func.func @transform_16(%arg0: i32, %arg1: i32) -> (i32, i32) {
    %c0_i32 = arith.constant 0 : i32
    %c0_i32_0 = arith.constant 0 : i32
    %c0_i32_1 = arith.constant 0 : i32
    return %c0_i32, %c0_i32_0 : i32, i32
  }
  func.func @transform_17(%arg0: i32, %arg1: i32) -> (i32, i32, i32, i32) {
    %c0_i32 = arith.constant 0 : i32
    %c0_i32_0 = arith.constant 0 : i32
    %c0_i32_1 = arith.constant 0 : i32
    return %arg1, %arg0, %c0_i32, %c0_i32_0 : i32, i32, i32, i32
  }
  func.func @transform_18(%arg0: i32, %arg1: i32) -> (i32, i32, i32) {
    %c0_i32 = arith.constant 0 : i32
    %c0_i32_0 = arith.constant 0 : i32
    %c0_i32_1 = arith.constant 0 : i32
    return %arg0, %c0_i32, %c0_i32_0 : i32, i32, i32
  }
  func.func @transform_19(%arg0: i32, %arg1: i32) -> (i32, i32, i32) {
    %c0_i32 = arith.constant 0 : i32
    %c0_i32_0 = arith.constant 0 : i32
    %c0_i32_1 = arith.constant 0 : i32
    return %arg0, %c0_i32, %c0_i32_0 : i32, i32, i32
  }
}

</mosaic_0001>

<bundles_post_ra>
// kernel: forward.1
= control target key start
LH: loop header
LB: loop body
LE: loop exit
PB: predicated region body
PF: predicated region fallthrough
CT: control target
= control target key end

     0   :  { %s2346_s30 = smov 0   ;;  %s2348_s20 = smov 0   ;;  %s2617_s0 = inlined_call_operand.vmem [shape: f32[2,1,16,8], index: 0, kind: input, shape index: {}]   ;;  %s2618_s1 = inlined_call_operand.vmem [shape: f32[2,1,16,1], index: 1, kind: input, shape index: {}]   ;;  %s2619_s2 = inlined_call_operand.vmem [shape: f32[2,1,16,4], index: 2, kind: input, shape index: {}]   ;;  %s2620_s3 = inlined_call_operand.vmem [shape: f32[1,4], index: 3, kind: input, shape index: {}]   ;;  %s2621_s4 = inlined_call_operand.vmem [shape: f32[1,4], index: 4, kind: input, shape index: {}]   ;;  %s2622_s5 = inlined_call_operand.vmem [shape: f32[1,128], index: 5, kind: input, shape index: {}]   ;;  %s2623_s6 = inlined_call_operand.vmem [shape: f32[1,8,32], index: 6, kind: input, shape index: {}]   ;;  %s2624_s7 = inlined_call_operand.vmem [shape: f32[1,8,32], index: 7, kind: input, shape index: {}]   ;;  %s2625_s8 = inlined_call_operand.vmem [shape: f32[8,128], index: 8, kind: input, shape index: {}]   ;;  %s2626_s9 = inlined_call_operand.vmem [shape: f32[32,128], index: 9, kind: input, shape index: {}]   ;;  %s2627_s10 = inlined_call_operand.vmem [shape: f32[1,128], index: 10, kind: input, shape index: {}]   ;;  %s2628_s11 = inlined_call_operand.vmem [shape: f32[32,64], index: 11, kind: input, shape index: {}]   ;;  %s2629_s12 = inlined_call_operand.vmem [shape: f32[1,64], index: 12, kind: input, shape index: {}]   ;;  %s2630_s13 = inlined_call_operand.vmem [shape: f32[64,64], index: 13, kind: input, shape index: {}]   ;;  %s2631_s14 = inlined_call_operand.vmem [shape: f32[1,64], index: 14, kind: input, shape index: {}]   ;;  %s2632_s15 = inlined_call_operand.vmem [shape: f32[64,9], index: 15, kind: input, shape index: {}]   ;;  %s2633_s16 = inlined_call_operand.vmem [shape: f32[1,9], index: 16, kind: input, shape index: {}]   ;;  %s2634_s17 = inlined_call_operand.vmem [shape: f32[2,1,16,8], index: 17, kind: output, shape index: {0}]   ;;  %s2635_s18 = inlined_call_operand.vmem [shape: f32[1,8,32], index: 18, kind: output, shape index: {1}]   ;;  %s2636_s19 = inlined_call_operand.vmem [shape: f32[1,8,32], index: 19, kind: output, shape index: {2}]  }
   0x1   :  { %2639 = sst [smem:[#allocation8_spill]] %s2617_s0  ;;  %s2344_s0 = smov 0  }
   0x2   :  { %2640 = sst [smem:[#allocation9_spill]] %s2618_s1 }
   0x3   :  { %2641 = sst [smem:[#allocation10_spill]] %s2619_s2 }
   0x4   :  { %2642 = sst [smem:[#allocation11_spill]] %s2620_s3 }
   0x5   :  { %2643 = sst [smem:[#allocation12_spill]] %s2621_s4 }
   0x6   :  { %2644 = sst [smem:[#allocation13_spill]] %s2633_s16 }
   0x7   :  { %2645 = sst [smem:[#allocation14_spill]] %s2636_s19 }
   0x8 LB: > { %2646 = sst [smem:[#allocation5_spill]] %s2226_s30  ;;  %s39_s21 = sadd.s32 1, %s2226_s30  ;;  %s2230_s20 = sphi %s2348_s20, %s30_s20   ;;  %s2226_s30 = sphi %s2346_s30, %s2658_s30   ;;  %s2222_s0 = sphi %s2344_s0, %s2657_s0  }
   0x9   : > { %2647 = sst [smem:[#allocation6_spill]] %s2230_s20  ;;  %p1916_p0 = scmp.ge.s32.totalorder %s2230_s20, 1 }
   0xa   : > { %p40_p1 = scmp.ge.s32.totalorder %s39_s21, 2  ;;  %p612_p2 = scmp.lt.s32.totalorder %s2230_s20, 3 }
   0xc   : > { %s2660_s21 = smov (%p40_p1, %s39_s21), 0  ;;  %p613_p3 = pnand %p1916_p0, %p612_p2 }
   0xd   : > { %2648 = sst [smem:[#allocation7_spill]] %s2660_s21  ;;  %p710_p4 = scmp.lt.s32.totalorder (!%p613_p3), %s2222_s0, 1 }
   0xe   : > { %616 = sbr.rel (%p613_p3) target bundleno = 2839 (0xb17), region = 88  ;;  %s2649_s24 = sld [smem:[#allocation8_spill]] (!%p613_p3) }
   0xf   : > { %s2650_s27 = sld [smem:[#allocation9_spill]] (!%p613_p3)  ;;  %s2651_s19 = sld [smem:[#allocation10_spill]] (!%p613_p3) }
  0x10   : > { %p1925_p5 = scmp.ne.s32.totalorder (!%p613_p3), %s2222_s0, 0 }
  0x15   : > { %s711_s1 = scalar_select %p710_p4, %s2222_s0, 1 }
  0x16   : > { %765 = sbr.rel (%p1925_p5) target bundleno = 29 (0x1d), region = 92  ;;  %v766_v0 = vld [vmem:[%s2623_s6] sm:$0xff] (!%p1925_p5)  ;;  %vm767_vm0 = vcmask (!%p1925_p5), 261120  }
  0x17   : > { %s1952_s22 = sshll.u32 %s711_s1, 4  ;;  %v769_v1 = vld [vmem:[%s2624_s7] sm:$0xff] (!%p1925_p5)  ;;  %768 = vst.msk [vmem:[#allocation2] sm:$0xff] (!%p1925_p5), %vm767_vm0, %v766_v0 }
  0x18   : > { %s718_s25 = scalar_lea.vmem %s2649_s24, %s1952_s22  ;;  %s2368_s28 = scalar_lea.vmem %s2650_s27, %s1952_s22  ;;  %770 = vst.msk [vmem:[#allocation3] sm:$0xff] (!%p1925_p5), %vm767_vm0, %v769_v1 }
  0x19   : > { %s2373_s20 = scalar_lea.vmem %s2651_s19, %s1952_s22  ;;  %s2378_s16 = scalar_lea.vmem %s2634_s17, %s1952_s22 }
  0x1d PF: > { %v869_v2 = vld [vmem:[%s2368_s28] sm:$0xff]  ;;  %v866_v4 = vld [vmem:[%s2626_s9 + $0x8] sm:$0xff]  ;;  %v2232_v5 = vmov 0   ;;  %v2233_v6 = vmov 0.0|0.0   ;;  %vm781_vm1 = vcmask 64512   ;;  %v867_v11 = vld [vmem:[%s2626_s9 + $0x10] sm:$0xff]  ;;  %v956_v24 = vlaneseq }
  0x1e   : > { %v865_v3 = vld [vmem:[%s2626_s9] sm:$0xff]  ;;  %2159 = vset.pattern.permute.xlu0 %v2232_v5  ;;  %2071 = vmatprep.subr.bf16.mxu1 %v2233_v6  ;;  %v772_v10 = vld [vmem:[%s718_s25 + $0x8] sm:$0xff]  ;;  %v868_v12 = vld [vmem:[%s2626_s9 + $0x18] sm:$0xff]  ;;  %vm2234_vm2 = vmmov 0   ;;  %v2235_v14 = vmov 0.0   ;;  %vm880_vm3 = vcmask 261120  }
  0x1f   : > { %v2072_v7 = vpack.c.bf16 %v866_v4, %v865_v3  ;;  %v773_v8 = vld [vmem:[%s2625_s8] sm:$0xff]  ;;  %875 = vperm.xlu0 %2159, %v869_v2   ;;  %v2075_v13 = vpack.c.bf16 %v868_v12, %v867_v11  ;;  %2008 = vmatprep.mubr.msk.f32.mxu1 %vm2234_vm2, %v2235_v14  ;;  %v872_v16 = vld [vmem:[#allocation3] sm:$0xff]  ;;  %v957_v25 = vshrl.u32 %v956_v24, 7  ;;  %s2237_s19 = smov 64   ;;  %v1217_v24 = vld [vmem:[%s2630_s13 + $0x38] sm:$0xff]  ;;  %vm1225_vm4 = vcmask 523264  }
  0x20   : > { %v771_v9 = vld [vmem:[%s718_s25] sm:$0xff]  ;;  %1995 = vmatprep.subr.mxu0 %v773_v8  ;;  %s2236_s25 = smov 32   ;;  %v870_v39 = vld [vmem:[%s2368_s28 + $0x8] sm:$0xff]  ;;  %s2652_s28 = sld [smem:[#allocation13_spill]]  ;;  %vm1463_vm5 = vcmask 31744   ;;  %vm1681_vm6 = vcmask 15360  }
  0x21   : > { %2073 = vmatpush3.bf16.msra.mxu1 %v2072_v7  ;;  %1996 = vmatpush3.msra.mxu0 %v773_v8  ;;  %v871_v15 = vld [vmem:[#allocation2] sm:$0xff]  ;;  %v958_v26 = vsub.s32 0, %v957_v25  ;;  %v1117_v5 = vld [vmem:[%s2628_s11 + $0x8] sm:$0xff]  ;;  %v1119_v8 = vld [vmem:[%s2628_s11 + $0x18] sm:$0xff]  ;;  %s2238_s4 = smov 124   ;;  %s2653_s21 = sld [smem:[#allocation12_spill]] }
  0x22   : > { %1997 = vmatprep.mubr.msk.f32.mxu0 %vm781_vm1, %v771_v9  ;;  %2074 = vmatprep.subr.bf16.mxu1 %v2233_v6  ;;  %v1926_v20 = vld [vmem:[%s2627_s10] ss:$0 sm:$0xff]  ;;  %s2654_s26 = sld [smem:[#allocation11_spill]]  ;;  %s2240_s27 = smov 4   ;;  %vm1678_vm7 = vcmask 7168   ;;  %vm1684_vm8 = vcmask 23552  }
  0x23   : > { %1998 = vmatmul.mubr.msk.f32.vlgmr.msra.gmra.mrb[0].mxu0 %vm781_vm1, %v772_v10  ;;  %2077 = vmatprep.subr.bf16.mxu0 %v2233_v6  ;;  %v863_v27 = vld [vmem:[%s2622_s5] sm:$0x1]  ;;  %s2241_s29 = smov 120   ;;  %s2242_s1 = smov 122  }
  0x24   : > { %2019 = vmatprep.mubr.msk.f32.mxu0 %vm2234_vm2, %v2235_v14  ;;  %2079 = vmatpush3.bf16.msra.mxu0 %v2072_v7  ;;  %v959_v29 = vrot.slane %v863_v27, %v958_v26  ;;  %v864_v34 = vsub.f32 1.0, %v863_v27  ;;  %v1116_v4 = vld [vmem:[%s2628_s11] sm:$0xff]  ;;  %v1118_v7 = vld [vmem:[%s2628_s11 + $0x10] sm:$0xff]  ;;  %s2243_s2 = smov 96  }
  0x25   : > { %2076 = vmatpush3.bf16.msra.mxu1 %v2075_v13  ;;  %2080 = vmatprep.subr.bf16.mxu0 %v2233_v6  ;;  %v2083_v6 = vpack.c.bf16 %v1117_v5, %v1116_v4  ;;  %v2087_v9 = vpack.c.bf16 %v1119_v8, %v1118_v7  ;;  %v1210_v14 = vld [vmem:[%s2630_s13] sm:$0xff] }
  0x26   : > { %v968_v35 = vrot.slane %v864_v34, %v958_v26  ;;  %v1931_v26 = vld [vmem:[%s2629_s12] ss:$0 sm:$0xff]  ;;  %v1310_v34 = vld [vmem:[%s2632_s15 + $0x8] sm:$0xff] }
  0x27   : > { %2084 = vmatprep.subr.bf16.mxu1 %v2083_v6 }
  0x28   : > { %2082 = vmatpush3.bf16.msra.mxu0 %v2075_v13 }
  0x9e   : > { %v876_v17 = vpop.permute.xlu0 %875 }
  0x9f   : > { %v878_v18 = vmul.f32 %v876_v17, %v871_v15  ;;  %v879_v19 = vmul.f32 %v876_v17, %v872_v16  ;;  %v1211_v15 = vld [vmem:[%s2630_s13 + $0x8] sm:$0xff]  ;;  %v1212_v17 = vld [vmem:[%s2630_s13 + $0x10] sm:$0xff] }
  0xa0   : > { %v2091_v16 = vpack.c.bf16 %v1211_v15, %v1210_v14  ;;  %v1426_v14 = vld [vmem:[%s2373_s20 + $0x8] sm:$0xff]  ;;  %v1940_v15 = vld [vmem:[%s2653_s21] ss:$0 sm:$0xff] }
  0xa1   : > { %972 = vrot.lane.b32.xlu1 %v879_v19, %s2236_s25  ;;  %2009 = vmatmul.mubr.msk.f32.vlgmr.msra.gmra.mrb[0].mxu1 %vm880_vm3, %v878_v18  ;;  %v1213_v18 = vld [vmem:[%s2630_s13 + $0x18] sm:$0xff] }
  0xa2   : > { %2086 = vmatpush3.bf16.msra.mxu1 %v2083_v6  ;;  %2092 = vmatprep.subr.bf16.mxu0 %v2091_v16  ;;  %v2095_v19 = vpack.c.bf16 %v1213_v18, %v1212_v17  ;;  %v1435_v17 = vsub.f32 %v1426_v14, %v1940_v15  ;;  %v1941_v18 = vld [vmem:[%s2654_s26] ss:$0 sm:$0xff] }
  0xa3   : > { %2088 = vmatprep.subr.bf16.mxu1 %v2087_v9 }
  0xa6   : > { %2090 = vmatpush3.bf16.msra.mxu1 %v2087_v9 }
  0xf6   : > { %v1999_v21 = vpop.f32.mrb[0].mxu0 }
  0xf7   : > { %v860_v22 = vadd.f32 %v1999_v21, %v1926_v20  ;;  %v854_v23 = vpop.f32.mrb[1].mxu0  ;;  %v1215_v21 = vld [vmem:[%s2630_s13 + $0x28] sm:$0xff] }
  0xf8   : > { %v855_v28 = vadd.f32 %v1926_v20, %v854_v23  ;;  %v1214_v20 = vld [vmem:[%s2630_s13 + $0x20] sm:$0xff] }
  0xf9   : > { %v2099_v23 = vpack.c.bf16 %v1215_v21, %v1214_v20  ;;  %v2526_v20 = vmul.f32 %v1941_v18, %v1435_v17 }
 0x113   : > { %v973_v42 = vpop.permute.xlu1 %972 }
 0x174   : > { %v950_v30 = vpop.f32.mrb[0].mxu1 }
 0x175   : > { %v954_v31 = vadd.f32 %v950_v30, %v855_v28  ;;  %v2010_v32 = vpop.f32.mrb[1].mxu1 }
 0x177   : > { %v961_v33 = vmul.f32 %v959_v29, %v954_v31 }
 0x179   : > { %2160 = vtanh.f32 %v961_v33  ;;  %v1309_v33 = vld [vmem:[%s2632_s15] sm:$0xff] }
 0x183   : > { %v2161_v36 = vpop.eup %2160 }
 0x184   : > { %v963_v37 = vmul.f32 %v2161_v36, %v959_v29  ;;  %v1311_v36 = vld [vmem:[%s2632_s15 + $0x10] sm:$0xff] }
 0x186   : > { %v970_v38 = vadd.f32 %v968_v35, %v963_v37  ;;  %v1312_v37 = vld [vmem:[%s2632_s15 + $0x18] sm:$0xff] }
 0x188   : > { %977 = vrot.lane.b32.xlu0 %v970_v38, %s2237_s19  ;;  %v975_v43 = vmul.f32 %v973_v42, %v970_v38 }
 0x18c   : > { %999 = vperm.xlu0 %2159, %v870_v39   ;;  %v1313_v39 = vld [vmem:[%s2632_s15 + $0x20] sm:$0xff] }
 0x1fa   : > { %v978_v40 = vpop.permute.xlu0 %977 }
 0x1fb   : > { %v980_v41 = vmul.f32 %v978_v40, %v970_v38  ;;  %v1314_v40 = vld [vmem:[%s2632_s15 + $0x28] sm:$0xff] }
 0x1fc   : > { %v2115_v42 = vpack.c.bf16 %v1314_v40, %v1313_v39 }
 0x1fd   : > { %982 = vrot.lane.b32.xlu1 %v980_v41, %s2236_s25  ;;  %v1315_v41 = vld [vmem:[%s2632_s15 + $0x30] sm:$0xff] }
 0x20b   : > { %v1000_v49 = vpop.permute.xlu0 %999 }
 0x26f   : > { %v983_v44 = vpop.permute.xlu1 %982 }
 0x270   : > { %v985_v45 = vadd.f32 %v983_v44, %v975_v43  ;;  %v1316_v43 = vld [vmem:[%s2632_s15 + $0x38] sm:$0xff] }
 0x271   : > { %v2119_v44 = vpack.c.bf16 %v1316_v43, %v1315_v41 }
 0x272   : > { %2162 = vtanh.f32 %v985_v45  ;;  %v1003_v61 = vmul.f32 %v1000_v49, %v985_v45  ;;  %v1934_v45 = vld [vmem:[%s2631_s14] ss:$0 sm:$0xff] }
 0x27c   : > { %v2163_v46 = vpop.eup %2162 }
 0x27d   : > { %988 = vrot.lane.b32.xlu1 %v2163_v46, %s2237_s19 }
 0x2ef   : > { %v989_v47 = vpop.permute.xlu1 %988 }
 0x2f0   : > { %v991_v48 = vmul.f32 %v989_v47, %v970_v38  ;;  %v2111_v38 = vpack.c.bf16 %v1312_v37, %v1311_v36 }
 0x2f2   : > { %v1002_v50 = vmul.f32 %v1000_v49, %v991_v48 }
 0x2f4   : > { %1005 = vrot.lane.b32.xlu0 %v1002_v50, %s2236_s25 }
 0x366   : > { %v1006_v51 = vpop.permute.xlu0 %1005 }
 0x367   : > { %2020 = vmatmul.mubr.msk.f32.vlgmr.msra.gmra.mrb[2].mxu0 %vm880_vm3, %v1006_v51 }
 0x368   : > { %2094 = vmatpush3.bf16.msra.mxu0 %v2091_v16  ;;  %v1425_v16 = vld [vmem:[%s2373_s20] sm:$0xff]  ;;  %s2239_s20 = smov 8  }
 0x369   : > { %2096 = vmatprep.subr.bf16.mxu0 %v2095_v19 }
 0x36c   : > { %2098 = vmatpush3.bf16.msra.mxu0 %v2095_v19  ;;  %v1434_v19 = vsub.f32 %v1425_v16, %v1940_v15 }
 0x36d   : > { %2100 = vmatprep.subr.bf16.mxu0 %v2099_v23 }
 0x36e   : > { %v2528_v21 = vmul.f32 %v1941_v18, %v1434_v19 }
 0x370   : > { %2102 = vmatpush3.bf16.msra.mxu0 %v2099_v23  ;;  %v1580_v23 = vsub.f32 1.0, %v2528_v21 }
 0x43a   : > { %v1075_v52 = vpop.f32.mrb[2].mxu0 }
 0x43b   : > { %v1079_v53 = vadd.f32 %v1075_v52, %v860_v22  ;;  %v2021_v54 = vpop.f32.mrb[3].mxu0  ;;  %v1216_v22 = vld [vmem:[%s2630_s13 + $0x30] sm:$0xff]  ;;  %v1937_v52 = vld [vmem:[%s2652_s28] ss:$0 sm:$0xff] }
 0x43c   : > { %v2103_v25 = vpack.c.bf16 %v1217_v24, %v1216_v22  ;;  %v1581_v22 = vsub.f32 1.0, %v2526_v20 }
 0x43d   : > { %v1080_v55 = vmul.f32 %v1079_v53, %v959_v29 }
 0x43e   : > { %2104 = vmatprep.subr.bf16.mxu0 %v2103_v25 }
 0x43f   : > { %2164 = vtanh.f32 %v1080_v55  ;;  %2106 = vmatpush3.bf16.msra.mxu0 %v2103_v25 }
 0x449   : > { %v2165_v56 = vpop.eup %2164 }
 0x44a   : > { %v1082_v57 = vmul.f32 %v2165_v56, %v959_v29 }
 0x44c   : > { %v1083_v58 = vadd.f32 %v1082_v57, %v968_v35  ;;  %v2107_v35 = vpack.c.bf16 %v1310_v34, %v1309_v33 }
 0x44e   : > { %1086 = vrot.lane.b32.xlu1 %v1083_v58, %s2237_s19  ;;  %v1084_v62 = vmul.f32 %v1083_v58, %v1003_v61  ;;  %2108 = vmatprep.subr.bf16.mxu1 %v2107_v35 }
 0x4c0   : > { %v1087_v59 = vpop.permute.xlu1 %1086 }
 0x4c1   : > { %v1089_v60 = vmul.f32 %v1087_v59, %v1083_v58 }
 0x4c3   : > { %1091 = vrot.lane.b32.xlu0 %v1089_v60, %s2236_s25 }
 0x4c7   : > { %993 = vrot.lane.b32.xlu0 %v991_v48, %s2236_s25 }
 0x535   : > { %v1092_v63 = vpop.permute.xlu0 %1091 }
 0x536   : > { %v2421_v0 = vadd.f32 %v1092_v63, %v1084_v62 }
 0x538   : > { %2166 = vtanh.f32 %v2421_v0 }
 0x539   : > { %v994_v1 = vpop.permute.xlu0 %993 }
 0x53a   : > { %996 = vst.msk [vmem:[#allocation4] sm:$0xff] %vm880_vm3, %v994_v1 }
 0x541   : > { %v1114_v2 = vld [vmem:[#allocation4] sm:$0xff] }
 0x542   : > { %v2167_v3 = vpop.eup %2166  ;;  %2030 = vmatprep.mubr.msk.f32.mxu1 %vm880_vm3, %v1114_v2 }
 0x543   : > { %1097 = vrot.lane.b32.xlu1 %v2167_v3, %s2237_s19 }
 0x5b5   : > { %v1098_v10 = vpop.permute.xlu1 %1097 }
 0x5b6   : > { %v1100_v11 = vmul.f32 %v1098_v10, %v1083_v58 }
 0x5b8   : > { %1102 = vrot.lane.b32.xlu1 %v1100_v11, %s2236_s25  ;;  %s2655_s25 = sld [smem:[#allocation14_spill]] }
 0x62a   : > { %v1103_v12 = vpop.permute.xlu1 %1102 }
 0x62b   : > { %1105 = vst.msk [vmem:[#allocation4 + $0x8] sm:$0xff] %vm880_vm3, %v1103_v12  ;;  %1106 = vst.msk [vmem:[#allocation2] sm:$0xff] %vm880_vm3, %v1103_v12 }
 0x62c   : > { %1112 = vst.msk [vmem:[%s2635_s18] sm:$0xff] %vm880_vm3, %v1103_v12 }
 0x632   : > { %v1115_v13 = vld [vmem:[#allocation4 + $0x8] sm:$0xff] }
 0x633   : > { %2031 = vmatmul.mubr.msk.f32.vlgmr.msra.gmra.mrb[2].mxu1 %vm880_vm3, %v1115_v13 }
 0x634   : > { %2110 = vmatpush3.bf16.msra.mxu1 %v2107_v35 }
 0x635   : > { %2112 = vmatprep.subr.bf16.mxu1 %v2111_v38 }
 0x638   : > { %2114 = vmatpush3.bf16.msra.mxu1 %v2111_v38 }
 0x639   : > { %2116 = vmatprep.subr.bf16.mxu1 %v2115_v42 }
 0x63c   : > { %2118 = vmatpush3.bf16.msra.mxu1 %v2115_v42 }
 0x63d   : > { %2120 = vmatprep.subr.bf16.mxu1 %v2119_v44 }
 0x640   : > { %2122 = vmatpush3.bf16.msra.mxu1 %v2119_v44 }
 0x706   : > { %v2032_v27 = vpop.f32.mrb[2].mxu1 }
 0x707   : > { %v1205_v28 = vadd.f32 %v2032_v27, %v1931_v26  ;;  %v1199_v29 = vpop.f32.mrb[3].mxu1 }
 0x708   : > { %v1200_v30 = vadd.f32 %v1931_v26, %v1199_v29 }
 0x70a   : > { %2168 = vtanh.f32 %v1200_v30 }
 0x70b   : > { %2170 = vtanh.f32 %v1205_v28 }
 0x714   : > { %v2169_v31 = vpop.eup %2168 }
 0x715   : > { %v2171_v32 = vpop.eup %2170  ;;  %2049 = vmatprep.mubr.msk.f32.mxu0 %vm1225_vm4, %v2169_v31 }
 0x716   : > { %2050 = vmatmul.mubr.msk.f32.vlgmr.msra.gmra.mrb[4].mxu0 %vm1225_vm4, %v2171_v32 }
 0x7e9   : > { %v2051_v46 = vpop.f32.mrb[4].mxu0 }
 0x7ea   : > { %v1304_v47 = vadd.f32 %v2051_v46, %v1934_v45  ;;  %v1298_v48 = vpop.f32.mrb[5].mxu0 }
 0x7eb   : > { %v1299_v49 = vadd.f32 %v1934_v45, %v1298_v48 }
 0x7ed   : > { %2172 = vtanh.f32 %v1299_v49 }
 0x7ee   : > { %2174 = vtanh.f32 %v1304_v47 }
 0x7f7   : > { %v2173_v50 = vpop.eup %2172 }
 0x7f8   : > { %v2175_v51 = vpop.eup %2174  ;;  %2068 = vmatprep.mubr.msk.f32.mxu1 %vm1225_vm4, %v2173_v50 }
 0x7f9   : > { %2069 = vmatmul.mubr.msk.f32.vlgmr.msra.gmra.mrb[4].mxu1 %vm1225_vm4, %v2175_v51 }
 0x8cc   : > { %v2070_v53 = vpop.f32.mrb[4].mxu1 }
 0x8cd   : > { %v2508_v54 = vadd.f32 %v2070_v53, %v1937_v52  ;;  %v1396_v55 = vpop.f32.mrb[5].mxu1 }
 0x8ce   : > { %v2510_v56 = vadd.f32 %v1937_v52, %v1396_v55 }
 0x8cf   : > { %v1408_v57 = vand.u32 2147483647, %v2508_v54  ;;  %v1406_v6 = vmax.f32 %v2508_v54, 0.0 }
 0x8d0   : > { %v1407_v58 = vand.u32 2147483647, %v2510_v56  ;;  %v1405_v8 = vmax.f32 %v2510_v56, 0.0 }
 0x8d1   : > { %v1410_v59 = vsub.f32 0.0, %v1408_v57 }
 0x8d2   : > { %v1409_v60 = vsub.f32 0.0, %v1407_v58 }
 0x8d3   : > { %v1413_v61 = vmul.f32 1.442695, %v1410_v59 }
 0x8d4   : > { %v1411_v62 = vmul.f32 1.442695, %v1409_v60 }
 0x8d5   : > { %2176 = vpow2.f32 %v1413_v61 }
 0x8d6   : > { %2178 = vpow2.f32 %v1411_v62 }
 0x8df   : > { %v2177_v63 = vpop.eup %2176 }
 0x8e0   : > { %v2179_v1 = vpop.eup %2178  ;;  %v1416_v2 = vadd.f32 1.0, %v2177_v63 }
 0x8e1   : > { %v1415_v3 = vadd.f32 1.0, %v2179_v1 }
 0x8e2   : > { %2180 = vlog2.f32 %v1416_v2 }
 0x8e3   : > { %2182 = vlog2.f32 %v1415_v3 }
 0x8e4   : > { %2184 = vlog2.f32 %v1581_v22 }
 0x8e5   : > { %2186 = vlog2.f32 %v1580_v23 }
 0x8ec   : > { %v2181_v4 = vpop.eup %2180 }
 0x8ed   : > { %v2183_v5 = vpop.eup %2182  ;;  %v1420_v7 = vmul.f32 0.6931472, %v2181_v4 }
 0x8ee   : > { %v1418_v9 = vmul.f32 0.6931472, %v2183_v5  ;;  %v2185_v24 = vpop.eup %2184 }
 0x8ef   : > { %v1422_v10 = vadd.f32 %v1420_v7, %v1406_v6  ;;  %v2187_v26 = vpop.eup %2186  ;;  %v1585_v30 = vmul.f32 0.6931472, %v2185_v24 }
 0x8f0   : > { %v1421_v11 = vadd.f32 %v1418_v9, %v1405_v8  ;;  %v1583_v31 = vmul.f32 0.6931472, %v2187_v26 }
 0x8f1   : > { %v1424_v12 = vadd.f32 1.0, %v1422_v10 }
 0x8f2   : > { %v1423_v13 = vadd.f32 1.0, %v1421_v11 }
 0x8f3   : > { %1449 = vrot.lane.b32.xlu1 %v1424_v12, %s2238_s4  ;;  %v2539_v35 = vadd.f32 -1.0, %v1424_v12 }
 0x8f4   : > { %1447 = vrot.lane.b32.xlu0 %v1423_v13, %s2238_s4  ;;  %v2541_v39 = vadd.f32 -1.0, %v1423_v13 }
 0x965   : > { %v1450_v25 = vpop.permute.xlu1 %1449 }
 0x966   : > { %v2532_v27 = vadd.f32 %v1450_v25, %v1424_v12  ;;  %v1448_v28 = vpop.permute.xlu0 %1447 }
 0x967   : > { %v2534_v29 = vadd.f32 %v1448_v28, %v1423_v13 }
 0x968   : > { %1459 = vrot.lane.b32.xlu1 %v2532_v27, %s2239_s20 }
 0x969   : > { %1457 = vrot.lane.b32.xlu0 %v2534_v29, %s2239_s20 }
 0x96c   : > { %1590 = vrot.lane.b32.xlu1 %v1585_v30, %s2240_s27 }
 0x96d   : > { %1588 = vrot.lane.b32.xlu0 %v1583_v31, %s2240_s27 }
 0x9da   : > { %v1460_v32 = vpop.permute.xlu1 %1459 }
 0x9db   : > { %v1465_v33 = vsel %vm781_vm1, %v1424_v12, %v1460_v32  ;;  %v1458_v34 = vpop.permute.xlu0 %1457 }
 0x9dc   : > { %v1467_v36 = vadd.f32 1.0, %v1465_v33  ;;  %v1469_v37 = vadd.f32 2.0, %v1465_v33  ;;  %v1473_v38 = vadd.f32 4.0, %v1465_v33  ;;  %v1471_v40 = vadd.f32 3.0, %v1465_v33 }
 0x9dd   : > { %v2543_v41 = vadd.f32 5.0, %v1465_v33  ;;  %v2545_v42 = vadd.f32 6.0, %v1465_v33  ;;  %v1464_v43 = vsel %vm781_vm1, %v1423_v13, %v1458_v34 }
 0x9de   : > { %v1477_v44 = vmul.f32 %v1467_v36, %v1465_v33  ;;  %v1466_v45 = vadd.f32 1.0, %v1464_v43  ;;  %v1468_v46 = vadd.f32 2.0, %v1464_v43  ;;  %v1470_v47 = vadd.f32 3.0, %v1464_v43  ;;  %v1591_v48 = vpop.permute.xlu1 %1590 }
 0x9df   : > { %v1485_v49 = vmul.f32 %v2543_v41, %v1473_v38  ;;  %2188 = vrcp.f32 %v2545_v42  ;;  %v1472_v50 = vadd.f32 4.0, %v1464_v43  ;;  %v2550_v51 = vadd.f32 5.0, %v1464_v43  ;;  %v1589_v52 = vpop.permute.xlu0 %1588 }
 0x9e0   : > { %v1479_v53 = vmul.f32 %v1477_v44, %v1469_v37  ;;  %v1476_v55 = vmul.f32 %v1466_v45, %v1464_v43  ;;  %v2552_v57 = vadd.f32 6.0, %v1464_v43  ;;  %v1595_v58 = vmul.f32 %v2539_v35, %v1591_v48 }
 0x9e1   : > { %v1487_v59 = vmul.f32 %v1485_v49, %v1471_v40  ;;  %v1484_v60 = vmul.f32 %v2550_v51, %v1472_v50  ;;  %v1594_v61 = vmul.f32 %v2541_v39, %v1589_v52  ;;  %2190 = vlog2.f32 %v2545_v42 }
 0x9e2   : > { %v1478_v62 = vmul.f32 %v1476_v55, %v1468_v46  ;;  %2192 = vrcp.f32 %v2552_v57  ;;  %1600 = vrot.lane.b32.xlu1 %v1595_v58, %s2238_s4  ;;  %v1481_v63 = vmul.f32 %v1479_v53, %v1471_v40  ;;  %v1943_v19 = vadd.f32 -0.5, %v2545_v42 }
 0x9e3   : > { %v1489_v1 = vmul.f32 %v1487_v59, %v1469_v37  ;;  %v1486_v2 = vmul.f32 %v1484_v60, %v1470_v47  ;;  %1598 = vrot.lane.b32.xlu0 %v1594_v61, %s2238_s4  ;;  %2194 = vlog2.f32 %v2552_v57  ;;  %v1499_v15 = vmul.f32 %v1487_v59, %v1477_v44 }
 0x9e4   : > { %v2562_v3 = vmul.f32 %v1481_v63, %v1473_v38  ;;  %v1480_v4 = vmul.f32 %v1478_v62, %v1470_v47  ;;  %v1942_v32 = vadd.f32 -0.5, %v2552_v57  ;;  %v1502_v44 = vmul.f32 %v1484_v60, %v1478_v62 }
 0x9e5   : > { %v1491_v5 = vmul.f32 %v1489_v1, %v1467_v36  ;;  %v1495_v6 = vmul.f32 %v1489_v1, %v1465_v33  ;;  %v1488_v7 = vmul.f32 %v1486_v2, %v1468_v46  ;;  %v1498_v23 = vmul.f32 %v1486_v2, %v1476_v55 }
 0x9e6   : > { %v1493_v8 = vmul.f32 %v2562_v3, %v2543_v41  ;;  %v2566_v9 = vmul.f32 %v1480_v4, %v1472_v50  ;;  %v1503_v33 = vmul.f32 %v1485_v49, %v1479_v53  ;;  %v1507_v59 = vmul.f32 %v1481_v63, %v2543_v41 }
 0x9e7   : > { %v1490_v10 = vmul.f32 %v1488_v7, %v1466_v45  ;;  %v1494_v11 = vmul.f32 %v1488_v7, %v1464_v43  ;;  %v1497_v12 = vadd.f32 %v1495_v6, %v1491_v5  ;;  %v1506_v7 = vmul.f32 %v1480_v4, %v2550_v51 }
 0x9e8   : > { %v1492_v13 = vmul.f32 %v2566_v9, %v2550_v51  ;;  %2196 = vlog2.f32 %v1493_v8 }
 0x9e9   : > { %v2189_v14 = vpop.eup %2188  ;;  %v1496_v17 = vadd.f32 %v1494_v11, %v1490_v10  ;;  %v1501_v22 = vadd.f32 %v1499_v15, %v1497_v12 }
 0x9ea   : > { %v1519_v16 = vmul.f32 %v2189_v14, %v2189_v14  ;;  %2198 = vlog2.f32 %v1492_v13  ;;  %v1551_v49 = vmul.f32 0.5, %v2189_v14 }
 0x9eb   : > { %v2191_v18 = vpop.eup %2190  ;;  %2200 = vrcp.f32 %v1493_v8  ;;  %v1500_v38 = vadd.f32 %v1498_v23, %v1496_v17  ;;  %v1505_v48 = vadd.f32 %v1503_v33, %v1501_v22 }
 0x9ec   : > { %v2193_v24 = vpop.eup %2192  ;;  %v1523_v25 = vmul.f32 0.6931472, %v2191_v18  ;;  %v1537_v26 = vmul.f32 0.0007936508, %v1519_v16  ;;  %v1555_v28 = vmul.f32 0.003968254, %v1519_v16  ;;  %2202 = vrcp.f32 %v1492_v13 }
 0x9ed   : > { %v2195_v30 = vpop.eup %2194  ;;  %v1518_v31 = vmul.f32 %v2193_v24, %v2193_v24  ;;  %v1504_v53 = vadd.f32 %v1502_v44, %v1500_v38  ;;  %v1550_v11 = vmul.f32 0.5, %v2193_v24  ;;  %2204 = vlog2.f32 %v2526_v20 }
 0x9ee   : > { %v1531_v34 = vmul.f32 %v1943_v19, %v1523_v25  ;;  %v1539_v36 = vsub.f32 0.0027777778, %v1537_v26  ;;  %v1521_v37 = vmul.f32 0.6931472, %v2195_v30  ;;  %v1557_v43 = vsub.f32 0.008333334, %v1555_v28 }
 0x9ef   : > { %v1536_v40 = vmul.f32 0.0007936508, %v1518_v31  ;;  %v1554_v55 = vmul.f32 0.003968254, %v1518_v31  ;;  %v1553_v63 = vsub.f32 %v1523_v25, %v1551_v49  ;;  %2206 = vlog2.f32 %v2528_v21 }
 0x9f0   : > { %v1533_v45 = vsub.f32 %v1531_v34, %v2545_v42  ;;  %v1541_v46 = vmul.f32 %v1539_v36, %v1519_v16  ;;  %v1530_v47 = vmul.f32 %v1942_v32, %v1521_v37  ;;  %v1559_v52 = vmul.f32 %v1557_v43, %v1519_v16 }
 0x9f1   : > { %v1538_v50 = vsub.f32 0.0027777778, %v1536_v40  ;;  %v1556_v6 = vsub.f32 0.008333334, %v1554_v55  ;;  %v1509_v42 = vadd.f32 %v1507_v59, %v1505_v48  ;;  %v1552_v4 = vsub.f32 %v1521_v37, %v1550_v11 }
 0x9f2   : > { %v1543_v58 = vsub.f32 0.083333336, %v1541_v46  ;;  %v2197_v61 = vpop.eup %2196  ;;  %v1532_v1 = vsub.f32 %v1530_v47, %v2552_v57  ;;  %v1561_v5 = vsub.f32 0.083333336, %v1559_v52  ;;  %v1535_v60 = vadd.f32 0.9189385, %v1533_v45 }
 0x9f3   : > { %v1540_v2 = vmul.f32 %v1538_v50, %v1518_v31  ;;  %v1558_v12 = vmul.f32 %v1556_v6, %v1518_v31  ;;  %v1527_v15 = vmul.f32 0.6931472, %v2197_v61  ;;  %v1508_v57 = vadd.f32 %v1506_v7, %v1504_v53 }
 0x9f4   : > { %v1545_v62 = vmul.f32 %v2189_v14, %v1543_v58  ;;  %v1563_v10 = vmul.f32 %v1561_v5, %v1519_v16  ;;  %v2199_v13 = vpop.eup %2198  ;;  %v1534_v18 = vadd.f32 0.9189385, %v1532_v1  ;;  %v1511_v26 = vadd.f32 %v1509_v42, %v2562_v3 }
 0x9f5   : > { %v1542_v8 = vsub.f32 0.083333336, %v1540_v2  ;;  %v2201_v17 = vpop.eup %2200  ;;  %v1560_v22 = vsub.f32 0.083333336, %v1558_v12  ;;  %v1525_v30 = vmul.f32 0.6931472, %v2199_v13  ;;  %v1510_v25 = vadd.f32 %v1508_v57, %v2566_v9 }
 0x9f6   : > { %v1547_v41 = vadd.f32 %v1545_v62, %v1535_v60  ;;  %v1565_v14 = vsub.f32 %v1553_v63, %v1563_v10  ;;  %v2203_v28 = vpop.eup %2202  ;;  %v1569_v32 = vmul.f32 %v2201_v17, %v1511_v26  ;;  %v1947_v7 = vadd.f32 -2.0, %v2532_v27 }
 0x9f7   : > { %v1544_v19 = vmul.f32 %v2193_v24, %v1542_v8  ;;  %v1562_v16 = vmul.f32 %v1560_v22, %v1518_v31  ;;  %v1567_v24 = vmul.f32 %v2203_v28, %v1510_v25  ;;  %v2205_v9 = vpop.eup %2204  ;;  %v1946_v13 = vadd.f32 -2.0, %v2534_v29 }
 0x9f8   : > { %v1549_v23 = vsub.f32 %v1547_v41, %v1527_v15  ;;  %v1571_v36 = vsub.f32 %v1565_v14, %v1569_v32  ;;  %v1577_v40 = vmul.f32 0.6931472, %v2205_v9 }
 0x9f9   : > { %v1546_v51 = vadd.f32 %v1544_v19, %v1534_v18  ;;  %v1564_v34 = vsub.f32 %v1552_v4, %v1562_v16  ;;  %v2207_v37 = vpop.eup %2206 }
 0x9fa   : > { %1612 = vrot.lane.b32.xlu1 %v1549_v23, %s2238_s4  ;;  %v1637_v38 = vmul.f32 %v2539_v35, %v1571_v36  ;;  %v1575_v44 = vmul.f32 0.6931472, %v2207_v37  ;;  %v1579_v45 = vmul.f32 %v2539_v35, %v1577_v40 }
 0x9fb   : > { %v1548_v33 = vsub.f32 %v1546_v51, %v1525_v30  ;;  %v1570_v3 = vsub.f32 %v1564_v34, %v1567_v24 }
 0x9fc   : > { %v1578_v48 = vmul.f32 %v2541_v39, %v1575_v44 }
 0x9fd   : > { %1610 = vrot.lane.b32.xlu0 %v1548_v33, %s2238_s4  ;;  %v1636_v31 = vmul.f32 %v2541_v39, %v1570_v3 }
 0x9fe   : > { %1620 = vrot.lane.b32.xlu1 %v1549_v23, %s2241_s29 }
 0xa01   : > { %1618 = vrot.lane.b32.xlu0 %v1548_v33, %s2241_s29 }
 0xa02   : > { %1644 = vrot.lane.b32.xlu1 %v1637_v38, %s2238_s4 }
 0xa05   : > { %1642 = vrot.lane.b32.xlu0 %v1636_v31, %s2238_s4 }
 0xa06   : > { %1656 = vrot.lane.b32.xlu1 %v1571_v36, %s2241_s29 }
 0xa09   : > { %1654 = vrot.lane.b32.xlu0 %v1570_v3, %s2241_s29 }
 0xa0a   : > { %1672 = vrot.lane.b32.xlu1 %v2510_v56, %s2242_s1 }
 0xa54   : > { %v1601_v43 = vpop.permute.xlu1 %1600 }
 0xa55   : > { %v1605_v46 = vadd.f32 %v1601_v43, %v1579_v45  ;;  %v1599_v47 = vpop.permute.xlu0 %1598 }
 0xa56   : > { %v1604_v50 = vadd.f32 %v1599_v47, %v1578_v48 }
 0xa57   : > { %v1607_v55 = vsub.f32 %v1605_v46, %v1549_v23 }
 0xa58   : > { %v1606_v20 = vsub.f32 %v1604_v50, %v1548_v33 }
 0xa6c   : > { %v1613_v52 = vpop.permute.xlu1 %1612 }
 0xa6d   : > { %v1617_v58 = vsub.f32 %v1607_v55, %v1613_v52  ;;  %v1633_v56 = vadd.f32 %v1613_v52, %v1549_v23 }
 0xa6f   : > { %v1611_v59 = vpop.permute.xlu0 %1610 }
 0xa70   : > { %v1621_v49 = vpop.permute.xlu1 %1620  ;;  %v1616_v61 = vsub.f32 %v1606_v20, %v1611_v59  ;;  %v1632_v1 = vadd.f32 %v1611_v59, %v1548_v33 }
 0xa71   : > { %v1625_v21 = vadd.f32 %v1621_v49, %v1617_v58  ;;  %v1635_v53 = vsub.f32 %v1633_v56, %v1621_v49 }
 0xa73   : > { %v1619_v2 = vpop.permute.xlu0 %1618  ;;  %v1629_v35 = vsel %vm1463_vm5, %v1625_v21, 0.0  ;;  %v1639_v39 = vsub.f32 %v1635_v53, %v1637_v38 }
 0xa74   : > { %v1624_v5 = vadd.f32 %v1619_v2, %v1616_v61  ;;  %v1634_v6 = vsub.f32 %v1632_v1, %v1619_v2  ;;  %v1645_v60 = vpop.permute.xlu1 %1644  ;;  %1630 = vadd.xlane.f32.xlu1 %v1629_v35 }
 0xa75   : > { %v1649_v11 = vsub.f32 %v1639_v39, %v1645_v60 }
 0xa76   : > { %v1626_v62 = vsel %vm1463_vm5, %v1624_v5, 0.0  ;;  %v1638_v8 = vsub.f32 %v1634_v6, %v1636_v31 }
 0xa77   : > { %v1643_v42 = vpop.permute.xlu0 %1642  ;;  %1627 = vadd.xlane.f32.xlu0 %v1626_v62 }
 0xa78   : > { %v1657_v10 = vpop.permute.xlu1 %1656  ;;  %v1648_v63 = vsub.f32 %v1638_v8, %v1643_v42 }
 0xa79   : > { %v1661_v12 = vmul.f32 %v1947_v7, %v1657_v10 }
 0xa7b   : > { %v1655_v15 = vpop.permute.xlu0 %1654  ;;  %v1663_v41 = vadd.f32 %v1661_v12, %v1649_v11 }
 0xa7c   : > { %v1660_v17 = vmul.f32 %v1946_v13, %v1655_v15  ;;  %v1673_v27 = vpop.permute.xlu1 %1672 }
 0xa7d   : > { %v1667_v18 = vsel %vm1463_vm5, %v1663_v41, 0.0 }
 0xa7e   : > { %1668 = vadd.xlane.f32.xlu0 %v1667_v18  ;;  %v1662_v19 = vadd.f32 %v1660_v17, %v1648_v63 }
 0xa80   : > { %v1664_v57 = vsel %vm1463_vm5, %v1662_v19, 0.0 }
 0xa82   : > { %1665 = vadd.xlane.f32.xlu0 %v1664_v57 }
 0xa85   : > { %1108 = vrot.lane.b32.xlu1 %v2421_v0, %s2243_s2 }
 0xa98   : > { %1674 = vrot.lane.b32.xlu0 %v2508_v54, %s2242_s1 }
 0xb01   : > { %v1631_v29 = vpop.xlane.xlu1 %1630 }
 0xb04   : > { %v1628_v23 = vpop.xlane.xlu0 %1627 }
 0xb05   : > { %v1109_v22 = vpop.permute.xlu1 %1108 }
 0xb06   : > { %1111 = vst.msk [vmem:[#allocation3] sm:$0xff] %vm880_vm3, %v1109_v22  ;;  %1113 = vst.msk [vmem:[%s2655_s25] sm:$0xff] %vm880_vm3, %v1109_v22 }
 0xb0b   : > { %v1669_v26 = vpop.xlane.xlu0 %1668 }
 0xb0c   : > { %v1680_v30 = vsel %vm1678_vm7, %v1631_v29, %v1669_v26 }
 0xb0f   : > { %v1666_v0 = vpop.xlane.xlu0 %1665 }
 0xb10   : > { %v1679_v14 = vsel %vm1678_vm7, %v1628_v23, %v1666_v0 }
 0xb11   : > { %v1682_v54 = vsel %vm1681_vm6, %v1679_v14, %v1673_v27 }
 0xb12   : > { %v1685_v28 = vsel %vm1684_vm8, %v1682_v54, 0.0 }
 0xb13   : > { %1687 = vst.msk [vmem:[%s2378_s16] sm:$0xff] %vm781_vm1, %v1685_v28  ;;  %v1675_v51 = vpop.permute.xlu0 %1674 }
 0xb14   : > { %v1683_v4 = vsel %vm1681_vm6, %v1680_v30, %v1675_v51 }
 0xb15   : > { %v1686_v16 = vsel %vm1684_vm8, %v1683_v4, 0.0 }
 0xb16   : > { %1688 = vst.msk [vmem:[%s2378_s16 + $0x8] sm:$0xff] %vm781_vm1, %v1686_v16 }
 0xb17 PF: > { %s2656_s19 = sld [smem:[#allocation6_spill]]  ;;  %s2657_s0 = sld [smem:[#allocation5_spill]] }
 0xb18   : > { %s2658_s30 = sld [smem:[#allocation7_spill]] }
 0xb1d   : > { %s30_s20 = sadd.s32 1, %s2656_s19  }
 0xb1e   : > { %p27_p6 = scmp.ge.s32.totalorder %s30_s20, 4  }
 0xb20   :  { %29 = sbr.rel (!%p27_p6) target bundleno = 8 (0x8), region = 158 }

</bundles_post_ra>
